<compile_context>
chip_gen: v5e
topology: v5e:2x2
jax: 0.10.0
libtpu: 0.0.40
codegen_flags: <defaults>
</compile_context>

<pallas_src>
import jax
import jax.numpy as jnp
from jax.experimental import pallas as pl
from jax.experimental.pallas import tpu as pltpu

IN_FEATS = 128
H_FEATS = 128
O_FEATS = 256
SMILES_KMER_DIM = 574 + 64              # 638
FC1_IN = O_FEATS + SMILES_KMER_DIM      # 894
FC1_OUT, FC2_OUT, FC3_OUT, FC4_OUT = 575, 256, 64, 1

# Padded (lane/sublane friendly) sizes.
FC1_PAD = 640                            # 575 -> 640 (multiple of 128)
SK_PAD = 640                             # 638 -> 640
FC3_PAD = 128                            # 64  -> 128

N_NODES = 16                             # example graph size
BATCH = 2                                # example batch size


# --------------------------------------------------------------------------
# Fused kernel: GraphConv1 + (folded mean/gc2/fc1) + fc2..fc4, one grid step
# per sample.
# --------------------------------------------------------------------------
def without_mol_kernel(adj_ref, feat_ref, sk_ref,
                       gc1w_ref, gc1b_ref,
                       w2g_ref, w1s_ref, b1_ref,
                       w2_ref, b2_ref, w3_ref, b3_ref, w4_ref, b4_ref,
                       out_ref):
    f32, bf16 = jnp.float32, jnp.bfloat16

    def bdot(a, w_ref):
        # bf16 x bf16 on the MXU, f32 accumulation; no in-kernel weight copies.
        return jnp.dot(a.astype(bf16), w_ref[...], preferred_element_type=f32)

    adj_f32 = adj_ref[0]                       # (N, N)   A[dst, src] = weight
    adj = adj_f32.astype(bf16)
    x = feat_ref[0].astype(bf16)               # (N, 128)

    # GraphConv 1 (norm='none'): h1 = relu(A @ X @ W1 + b1)
    agg1 = jnp.dot(adj, x, preferred_element_type=f32)                # (N,128)
    h1 = jnp.maximum(bdot(agg1, gc1w_ref) + gc1b_ref[...], 0.0)       # (N,128)

    # mean_nodes folded into the adjacency (exact: no nonlinearity after gc2):
    #   hg = mean_dst(A @ h1 @ W2 + b2) = ((1/N) ones @ A) @ h1 @ W2 + b2
    inv_n = 1.0 / adj_f32.shape[0]
    a_mean = jnp.sum(adj_f32, axis=0, keepdims=True) * inv_n          # (1, N)
    hm = jnp.dot(a_mean.astype(bf16), h1.astype(bf16),
                 preferred_element_type=f32)                          # (1,128)

    # fc1 with concat folded into two branches and gc2 pre-folded into the
    # graph branch: z = relu(hm @ (W2 @ W1g) + sk @ W1s + (b1 + b2 @ W1g))
    z = jnp.maximum(bdot(hm, w2g_ref) + bdot(sk_ref[0], w1s_ref)
                    + b1_ref[...], 0.0)                               # (1,640)
    z = jnp.maximum(bdot(z, w2_ref) + b2_ref[...], 0.0)               # (1,256)
    z = jnp.maximum(bdot(z, w3_ref) + b3_ref[...], 0.0)               # (1,128)
    out_ref[0] = bdot(z, w4_ref) + b4_ref[...]                        # (1,1)


# --------------------------------------------------------------------------
# One-time host-side parameter preparation (transpose, fold, pad, bf16-cast).
# --------------------------------------------------------------------------
def _pad2(a, rows, cols):
    return jnp.zeros((rows, cols), a.dtype).at[:a.shape[0], :a.shape[1]].set(a)


def prepare_params(p):
    bf16, f32 = jnp.bfloat16, jnp.float32
    w1 = p["fc1_w"].astype(f32)                          # (575, 894) (out, in)
    w1g = w1[:, :O_FEATS].T                              # (256, 575)
    w1s = w1[:, O_FEATS:].T                              # (638, 575)
    # Fold gc2 into the fc1 graph branch (exact algebraic identity).
    w2g = p["gc2_w"].astype(f32) @ w1g                   # (128, 575)
    b1f = p["fc1_b"].astype(f32) + p["gc2_b"].astype(f32) @ w1g       # (575,)

    return dict(
        gc1_w=p["gc1_w"].astype(bf16),                                # (128,128)
        gc1_b=p["gc1_b"].reshape(1, -1).astype(f32),                  # (1,128)
        w2g=_pad2(w2g, IN_FEATS, FC1_PAD).astype(bf16),               # (128,640)
        w1s=_pad2(w1s, SK_PAD, FC1_PAD).astype(bf16),                 # (640,640)
        b1=_pad2(b1f.reshape(1, -1), 1, FC1_PAD).astype(f32),         # (1,640)
        w2=_pad2(p["fc2_w"].T.astype(f32), FC1_PAD, FC2_OUT).astype(bf16),
        b2=p["fc2_b"].reshape(1, -1).astype(f32),                     # (1,256)
        w3=_pad2(p["fc3_w"].T.astype(f32), FC2_OUT, FC3_PAD).astype(bf16),
        b3=_pad2(p["fc3_b"].reshape(1, -1), 1, FC3_PAD).astype(f32),  # (1,128)
        w4=_pad2(p["fc4_w"].T.astype(f32), FC3_PAD, FC4_OUT).astype(bf16),
        b4=p["fc4_b"].reshape(1, -1).astype(f32),                     # (1,1)
    )


# --------------------------------------------------------------------------
# Forward: single pallas_call, grid over the batch, weights resident in VMEM.
# --------------------------------------------------------------------------
@jax.jit
def without_mol_forward(g_seq_adj, feat_seq, smiles_kmer, pp):
    adj = g_seq_adj.astype(jnp.float32)                 # (B, N, N)
    feat = feat_seq.astype(jnp.float32)                 # (B, N, 128)
    B, N, _ = adj.shape

    sk = jnp.zeros((B, 1, SK_PAD), jnp.float32)
    sk = sk.at[:, 0, :SMILES_KMER_DIM].set(smiles_kmer.astype(jnp.float32))

    def per_sample(shape):                               # one block per sample
        nz = len(shape)
        return pl.BlockSpec((1,) + shape, lambda b, _z=(0,) * nz: (b,) + _z)

    def resident(arr):                                   # constant index_map
        z = (0,) * arr.ndim
        return pl.BlockSpec(arr.shape, lambda b, _z=z: _z)

    weight_keys = ("gc1_w", "gc1_b", "w2g", "w1s", "b1",
                   "w2", "b2", "w3", "b3", "w4", "b4")
    weights = tuple(pp[k] for k in weight_keys)

    in_specs = ([per_sample((N, N)), per_sample((N, IN_FEATS)),
                 per_sample((1, SK_PAD))]
                + [resident(w) for w in weights])

    flops_per_sample = 2 * (N * N * IN_FEATS + N * IN_FEATS * H_FEATS
                            + N * H_FEATS + H_FEATS * FC1_PAD
                            + SK_PAD * FC1_PAD + FC1_PAD * FC2_OUT
                            + FC2_OUT * FC3_PAD + FC3_PAD * FC4_OUT)
    weight_bytes = sum(int(w.size) * w.dtype.itemsize for w in weights)
    act_bytes = B * 4 * (N * N + N * IN_FEATS + SK_PAD + FC4_OUT)

    out = pl.pallas_call(
        without_mol_kernel,
        out_shape=jax.ShapeDtypeStruct((B, 1, FC4_OUT), jnp.float32),
        grid=(B,),
        in_specs=in_specs,
        out_specs=pl.BlockSpec((1, 1, FC4_OUT), lambda b: (b, 0, 0)),
        compiler_params=pltpu.CompilerParams(
            dimension_semantics=("parallel",)),
        cost_estimate=pl.CostEstimate(
            flops=B * flops_per_sample,
            transcendentals=0,
            bytes_accessed=weight_bytes + act_bytes),
    )(adj, feat, sk, *weights)
    return out.reshape(B, FC4_OUT)


def without_mol(g_mol, g_seq_adj, feat_seq, smiles_kmer, pp):
    """Signature-faithful wrapper: g_mol is accepted but unused by forward."""
    del g_mol
    return without_mol_forward(g_seq_adj, feat_seq, smiles_kmer, pp)


# --------------------------------------------------------------------------
# References.
# --------------------------------------------------------------------------
def _ref_one_fused(adj, feat, sk_pad, pp):
    """Same folded/padded bf16 weights as the kernel, f32 activations."""
    f32 = jnp.float32
    h1 = jnp.maximum(adj @ feat @ pp["gc1_w"].astype(f32) + pp["gc1_b"], 0.0)
    hm = adj.mean(axis=0, keepdims=True) @ h1
    z = jnp.maximum(hm @ pp["w2g"].astype(f32)
                    + sk_pad @ pp["w1s"].astype(f32) + pp["b1"], 0.0)
    z = jnp.maximum(z @ pp["w2"].astype(f32) + pp["b2"], 0.0)
    z = jnp.maximum(z @ pp["w3"].astype(f32) + pp["b3"], 0.0)
    return z @ pp["w4"].astype(f32) + pp["b4"]


def _ref_one_f32(adj, feat, sk, p):
    """Faithful f32 re-implementation of the PyTorch forward (unfused)."""
    h1 = jnp.maximum(adj @ feat @ p["gc1_w"] + p["gc1_b"], 0.0)
    h2 = adj @ h1 @ p["gc2_w"] + p["gc2_b"]
    hg = h2.mean(axis=0, keepdims=True)
    f = jnp.concatenate([hg, sk[None, :]], axis=1)
    z = jnp.maximum(f @ p["fc1_w"].T + p["fc1_b"], 0.0)
    z = jnp.maximum(z @ p["fc2_w"].T + p["fc2_b"], 0.0)
    z = jnp.maximum(z @ p["fc3_w"].T + p["fc3_b"], 0.0)
    return z @ p["fc4_w"].T + p["fc4_b"]


# --------------------------------------------------------------------------
# Deterministic parameter init (PyTorch/DGL-style uniform fan-in scaling).
# --------------------------------------------------------------------------
def init_params(key):
    keys = iter(jax.random.split(key, 32))

    def u(shape, scale):
        return jax.random.uniform(next(keys), shape, jnp.float32, -scale, scale)

    def lin(out_dim, in_dim):                 # nn.Linear layout: (out, in)
        s = 1.0 / (in_dim ** 0.5)
        return u((out_dim, in_dim), s), u((out_dim,), s)

    def gconv(in_dim, out_dim):               # DGL GraphConv layout: (in, out)
        s = 1.0 / (in_dim ** 0.5)
        return u((in_dim, out_dim), s), u((out_dim,), s)

    gc1_w, gc1_b = gconv(IN_FEATS, H_FEATS)
    gc2_w, gc2_b = gconv(H_FEATS, O_FEATS)
    fc1_w, fc1_b = lin(FC1_OUT, FC1_IN)
    fc2_w, fc2_b = lin(FC2_OUT, FC1_OUT)
    fc3_w, fc3_b = lin(FC3_OUT, FC2_OUT)
    fc4_w, fc4_b = lin(FC4_OUT, FC3_OUT)
    return dict(gc1_w=gc1_w, gc1_b=gc1_b, gc2_w=gc2_w, gc2_b=gc2_b,
                fc1_w=fc1_w, fc1_b=fc1_b, fc2_w=fc2_w, fc2_b=fc2_b,
                fc3_w=fc3_w, fc3_b=fc3_b, fc4_w=fc4_w, fc4_b=fc4_b)


if __name__ == "__main__":
    key = jax.random.PRNGKey(0)
    k_p, k_w, k_m, k_feat, k_sk = jax.random.split(key, 5)

    params = init_params(k_p)
    pp = prepare_params(params)        # one-time prep, outside the jitted fwd

    # Example batch of dense weighted adjacencies: ~50% of directed edges
    # present, uniform edge weights in [0, 1).  adj[b, dst, src] = weight.
    edge_w = jax.random.uniform(k_w, (BATCH, N_NODES, N_NODES), jnp.float32)
    mask = (jax.random.uniform(k_m, (BATCH, N_NODES, N_NODES)) < 0.5
            ).astype(jnp.float32)
    adj = edge_w * mask

    feat_seq = jax.random.normal(k_feat, (BATCH, N_NODES, IN_FEATS), jnp.float32)
    smiles_kmer = jax.random.normal(k_sk, (BATCH, SMILES_KMER_DIM), jnp.float32)
    g_mol = None   # unused by Without_MOL.forward (kept for signature fidelity)

    out = without_mol(g_mol, adj, feat_seq, smiles_kmer, pp)
    out = jax.block_until_ready(out)
    assert out.shape == (BATCH, FC4_OUT)

    # Reference 1: same folded/padded bf16 weights, f32 activations.
    sk_pad = jnp.zeros((BATCH, 1, SK_PAD), jnp.float32)
    sk_pad = sk_pad.at[:, 0, :SMILES_KMER_DIM].set(smiles_kmer)
    ref_pp = jnp.concatenate(
        [_ref_one_fused(adj[b], feat_seq[b], sk_pad[b], pp)
         for b in range(BATCH)], axis=0)
    assert jnp.allclose(out, ref_pp, rtol=3e-2, atol=3e-2), (out, ref_pp)

    # Reference 2: faithful f32 PyTorch-semantics forward (looser: bf16 weights).
    ref_f32 = jnp.concatenate(
        [_ref_one_f32(adj[b], feat_seq[b], smiles_kmer[b], params)
         for b in range(BATCH)], axis=0)
    assert jnp.allclose(out, ref_f32, rtol=1e-1, atol=1e-1), (out, ref_f32)

    print("KERNEL_OK")
</pallas_src>

<mosaic_0001>
module attributes {stable_mosaic.version = 11 : i64} {
  func.func @without_mol_kernel(%arg0: i32, %arg1: memref<1x16x16xf32, #tpu.memory_space<vmem>>, %arg2: memref<1x16x128xf32, #tpu.memory_space<vmem>>, %arg3: memref<1x1x640xf32, #tpu.memory_space<vmem>>, %arg4: memref<128x128xbf16, #tpu.memory_space<vmem>>, %arg5: memref<1x128xf32, #tpu.memory_space<vmem>>, %arg6: memref<128x640xbf16, #tpu.memory_space<vmem>>, %arg7: memref<640x640xbf16, #tpu.memory_space<vmem>>, %arg8: memref<1x640xf32, #tpu.memory_space<vmem>>, %arg9: memref<640x256xbf16, #tpu.memory_space<vmem>>, %arg10: memref<1x256xf32, #tpu.memory_space<vmem>>, %arg11: memref<256x128xbf16, #tpu.memory_space<vmem>>, %arg12: memref<1x128xf32, #tpu.memory_space<vmem>>, %arg13: memref<128x1xbf16, #tpu.memory_space<vmem>>, %arg14: memref<1x1xf32, #tpu.memory_space<vmem>>, %arg15: memref<1x1x1xf32, #tpu.memory_space<vmem>>) attributes {dimension_semantics = [#tpu.dimension_semantics<parallel>], iteration_bounds = array<i64: 2>, scalar_prefetch = 0 : i64, scratch_operands = 0 : i64, tpu.core_type = #tpu.core_type<tc>, window_params = [{transform_indices = @transform_0, window_bounds = array<i64: 1, 16, 16>}, {transform_indices = @transform_1, window_bounds = array<i64: 1, 16, 128>}, {transform_indices = @transform_2, window_bounds = array<i64: 1, 1, 640>}, {pipeline_mode = #tpu.pipeline_mode<synchronous>, transform_indices = @transform_3, window_bounds = array<i64: 128, 128>}, {pipeline_mode = #tpu.pipeline_mode<synchronous>, transform_indices = @transform_4, window_bounds = array<i64: 1, 128>}, {pipeline_mode = #tpu.pipeline_mode<synchronous>, transform_indices = @transform_5, window_bounds = array<i64: 128, 640>}, {pipeline_mode = #tpu.pipeline_mode<synchronous>, transform_indices = @transform_6, window_bounds = array<i64: 640, 640>}, {pipeline_mode = #tpu.pipeline_mode<synchronous>, transform_indices = @transform_7, window_bounds = array<i64: 1, 640>}, {pipeline_mode = #tpu.pipeline_mode<synchronous>, transform_indices = @transform_8, window_bounds = array<i64: 640, 256>}, {pipeline_mode = #tpu.pipeline_mode<synchronous>, transform_indices = @transform_9, window_bounds = array<i64: 1, 256>}, {pipeline_mode = #tpu.pipeline_mode<synchronous>, transform_indices = @transform_10, window_bounds = array<i64: 256, 128>}, {pipeline_mode = #tpu.pipeline_mode<synchronous>, transform_indices = @transform_11, window_bounds = array<i64: 1, 128>}, {pipeline_mode = #tpu.pipeline_mode<synchronous>, transform_indices = @transform_12, window_bounds = array<i64: 128, 1>}, {pipeline_mode = #tpu.pipeline_mode<synchronous>, transform_indices = @transform_13, window_bounds = array<i64: 1, 1>}, {transform_indices = @transform_14, window_bounds = array<i64: 1, 1, 1>}]} {
    %c0 = arith.constant 0 : index
    %c0_0 = arith.constant 0 : index
    %c0_1 = arith.constant 0 : index
    %0 = vector.load %arg1[%c0, %c0_0, %c0_1] : memref<1x16x16xf32, #tpu.memory_space<vmem>>, vector<1x16x16xf32>
    %1 = vector.shape_cast %0 : vector<1x16x16xf32> to vector<16x16xf32>
    %2 = arith.truncf %1 : vector<16x16xf32> to vector<16x16xbf16>
    %c0_2 = arith.constant 0 : index
    %c0_3 = arith.constant 0 : index
    %c0_4 = arith.constant 0 : index
    %3 = vector.load %arg2[%c0_2, %c0_3, %c0_4] : memref<1x16x128xf32, #tpu.memory_space<vmem>>, vector<1x16x128xf32>
    %4 = vector.shape_cast %3 : vector<1x16x128xf32> to vector<16x128xf32>
    %5 = arith.truncf %4 : vector<16x128xf32> to vector<16x128xbf16>
    %cst = arith.constant dense<0.000000e+00> : vector<16x128xf32>
    %6 = tpu.matmul %2, %5, %cst {dimension_numbers = #tpu.dot_dimension_numbers<[1], [0], [0], [1], [0, 0, 1, 1], [], []>} : vector<16x16xbf16>, vector<16x128xbf16>, vector<16x128xf32> -> vector<16x128xf32>
    %7 = arith.truncf %6 : vector<16x128xf32> to vector<16x128xbf16>
    %c0_5 = arith.constant 0 : index
    %c0_6 = arith.constant 0 : index
    %8 = vector.load %arg4[%c0_5, %c0_6] : memref<128x128xbf16, #tpu.memory_space<vmem>>, vector<128x128xbf16>
    %cst_7 = arith.constant dense<0.000000e+00> : vector<16x128xf32>
    %9 = tpu.matmul %7, %8, %cst_7 {dimension_numbers = #tpu.dot_dimension_numbers<[1], [0], [0], [1], [0, 0, 1, 1], [], []>} : vector<16x128xbf16>, vector<128x128xbf16>, vector<16x128xf32> -> vector<16x128xf32>
    %c0_8 = arith.constant 0 : index
    %c0_9 = arith.constant 0 : index
    %10 = vector.load %arg5[%c0_8, %c0_9] : memref<1x128xf32, #tpu.memory_space<vmem>>, vector<1x128xf32>
    %11 = vector.broadcast %10 : vector<1x128xf32> to vector<16x128xf32>
    %12 = arith.addf %9, %11 : vector<16x128xf32>
    %cst_10 = arith.constant 0.000000e+00 : f32
    %13 = vector.broadcast %cst_10 : f32 to vector<16x128xf32>
    %14 = arith.maximumf %12, %13 : vector<16x128xf32>
    %cst_11 = arith.constant dense<0.000000e+00> : vector<16xf32>
    %15 = vector.multi_reduction <add>, %1, %cst_11 [0] : vector<16x16xf32> to vector<16xf32>
    %16 = vector.shape_cast %15 : vector<16xf32> to vector<1x16xf32>
    %cst_12 = arith.constant 6.250000e-02 : f32
    %17 = vector.broadcast %cst_12 : f32 to vector<1x16xf32>
    %18 = arith.mulf %16, %17 : vector<1x16xf32>
    %19 = arith.truncf %18 : vector<1x16xf32> to vector<1x16xbf16>
    %20 = arith.truncf %14 : vector<16x128xf32> to vector<16x128xbf16>
    %cst_13 = arith.constant dense<0.000000e+00> : vector<1x128xf32>
    %21 = tpu.matmul %19, %20, %cst_13 {dimension_numbers = #tpu.dot_dimension_numbers<[1], [0], [0], [1], [0, 0, 1, 1], [], []>} : vector<1x16xbf16>, vector<16x128xbf16>, vector<1x128xf32> -> vector<1x128xf32>
    %22 = arith.truncf %21 : vector<1x128xf32> to vector<1x128xbf16>
    %c0_14 = arith.constant 0 : index
    %c0_15 = arith.constant 0 : index
    %23 = vector.load %arg6[%c0_14, %c0_15] : memref<128x640xbf16, #tpu.memory_space<vmem>>, vector<128x640xbf16>
    %cst_16 = arith.constant dense<0.000000e+00> : vector<1x640xf32>
    %24 = tpu.matmul %22, %23, %cst_16 {dimension_numbers = #tpu.dot_dimension_numbers<[1], [0], [0], [1], [0, 0, 1, 1], [], []>} : vector<1x128xbf16>, vector<128x640xbf16>, vector<1x640xf32> -> vector<1x640xf32>
    %c0_17 = arith.constant 0 : index
    %c0_18 = arith.constant 0 : index
    %c0_19 = arith.constant 0 : index
    %25 = vector.load %arg3[%c0_17, %c0_18, %c0_19] : memref<1x1x640xf32, #tpu.memory_space<vmem>>, vector<1x1x640xf32>
    %26 = vector.shape_cast %25 : vector<1x1x640xf32> to vector<1x640xf32>
    %27 = arith.truncf %26 : vector<1x640xf32> to vector<1x640xbf16>
    %c0_20 = arith.constant 0 : index
    %c0_21 = arith.constant 0 : index
    %28 = vector.load %arg7[%c0_20, %c0_21] : memref<640x640xbf16, #tpu.memory_space<vmem>>, vector<640x640xbf16>
    %cst_22 = arith.constant dense<0.000000e+00> : vector<1x640xf32>
    %29 = tpu.matmul %27, %28, %cst_22 {dimension_numbers = #tpu.dot_dimension_numbers<[1], [0], [0], [1], [0, 0, 1, 1], [], []>} : vector<1x640xbf16>, vector<640x640xbf16>, vector<1x640xf32> -> vector<1x640xf32>
    %30 = arith.addf %24, %29 : vector<1x640xf32>
    %c0_23 = arith.constant 0 : index
    %c0_24 = arith.constant 0 : index
    %31 = vector.load %arg8[%c0_23, %c0_24] : memref<1x640xf32, #tpu.memory_space<vmem>>, vector<1x640xf32>
    %32 = arith.addf %30, %31 : vector<1x640xf32>
    %cst_25 = arith.constant 0.000000e+00 : f32
    %33 = vector.broadcast %cst_25 : f32 to vector<1x640xf32>
    %34 = arith.maximumf %32, %33 : vector<1x640xf32>
    %35 = arith.truncf %34 : vector<1x640xf32> to vector<1x640xbf16>
    %c0_26 = arith.constant 0 : index
    %c0_27 = arith.constant 0 : index
    %36 = vector.load %arg9[%c0_26, %c0_27] : memref<640x256xbf16, #tpu.memory_space<vmem>>, vector<640x256xbf16>
    %cst_28 = arith.constant dense<0.000000e+00> : vector<1x256xf32>
    %37 = tpu.matmul %35, %36, %cst_28 {dimension_numbers = #tpu.dot_dimension_numbers<[1], [0], [0], [1], [0, 0, 1, 1], [], []>} : vector<1x640xbf16>, vector<640x256xbf16>, vector<1x256xf32> -> vector<1x256xf32>
    %c0_29 = arith.constant 0 : index
    %c0_30 = arith.constant 0 : index
    %38 = vector.load %arg10[%c0_29, %c0_30] : memref<1x256xf32, #tpu.memory_space<vmem>>, vector<1x256xf32>
    %39 = arith.addf %37, %38 : vector<1x256xf32>
    %cst_31 = arith.constant 0.000000e+00 : f32
    %40 = vector.broadcast %cst_31 : f32 to vector<1x256xf32>
    %41 = arith.maximumf %39, %40 : vector<1x256xf32>
    %42 = arith.truncf %41 : vector<1x256xf32> to vector<1x256xbf16>
    %c0_32 = arith.constant 0 : index
    %c0_33 = arith.constant 0 : index
    %43 = vector.load %arg11[%c0_32, %c0_33] : memref<256x128xbf16, #tpu.memory_space<vmem>>, vector<256x128xbf16>
    %cst_34 = arith.constant dense<0.000000e+00> : vector<1x128xf32>
    %44 = tpu.matmul %42, %43, %cst_34 {dimension_numbers = #tpu.dot_dimension_numbers<[1], [0], [0], [1], [0, 0, 1, 1], [], []>} : vector<1x256xbf16>, vector<256x128xbf16>, vector<1x128xf32> -> vector<1x128xf32>
    %c0_35 = arith.constant 0 : index
    %c0_36 = arith.constant 0 : index
    %45 = vector.load %arg12[%c0_35, %c0_36] : memref<1x128xf32, #tpu.memory_space<vmem>>, vector<1x128xf32>
    %46 = arith.addf %44, %45 : vector<1x128xf32>
    %cst_37 = arith.constant 0.000000e+00 : f32
    %47 = vector.broadcast %cst_37 : f32 to vector<1x128xf32>
    %48 = arith.maximumf %46, %47 : vector<1x128xf32>
    %49 = arith.truncf %48 : vector<1x128xf32> to vector<1x128xbf16>
    %c0_38 = arith.constant 0 : index
    %c0_39 = arith.constant 0 : index
    %50 = vector.load %arg13[%c0_38, %c0_39] : memref<128x1xbf16, #tpu.memory_space<vmem>>, vector<128x1xbf16>
    %cst_40 = arith.constant dense<0.000000e+00> : vector<1x1xf32>
    %51 = tpu.matmul %49, %50, %cst_40 {dimension_numbers = #tpu.dot_dimension_numbers<[1], [0], [0], [1], [0, 0, 1, 1], [], []>} : vector<1x128xbf16>, vector<128x1xbf16>, vector<1x1xf32> -> vector<1x1xf32>
    %c0_41 = arith.constant 0 : index
    %c0_42 = arith.constant 0 : index
    %52 = vector.load %arg14[%c0_41, %c0_42] : memref<1x1xf32, #tpu.memory_space<vmem>>, vector<1x1xf32>
    %53 = arith.addf %51, %52 : vector<1x1xf32>
    %c0_43 = arith.constant 0 : index
    %c0_44 = arith.constant 0 : index
    %c0_45 = arith.constant 0 : index
    %54 = vector.load %arg15[%c0_43, %c0_44, %c0_45] : memref<1x1x1xf32, #tpu.memory_space<vmem>>, vector<1x1x1xf32>
    %55 = vector.shape_cast %54 : vector<1x1x1xf32> to vector<1x1xf32>
    %56 = vector.shape_cast %53 : vector<1x1xf32> to vector<1x1x1xf32>
    tpu.vector_store %arg15[%c0_43, %c0_44, %c0_45], %56 {strides = array<i32>} : memref<1x1x1xf32, #tpu.memory_space<vmem>>, vector<1x1x1xf32>,
    return
  }
  func.func @transform_0(%arg0: i32) -> (i32, i32, i32) {
    %c0_i32 = arith.constant 0 : i32
    %c0_i32_0 = arith.constant 0 : i32
    %c0_i32_1 = arith.constant 0 : i32
    return %arg0, %c0_i32, %c0_i32_0 : i32, i32, i32
  }
  func.func @transform_1(%arg0: i32) -> (i32, i32, i32) {
    %c0_i32 = arith.constant 0 : i32
    %c0_i32_0 = arith.constant 0 : i32
    %c0_i32_1 = arith.constant 0 : i32
    return %arg0, %c0_i32, %c0_i32_0 : i32, i32, i32
  }
  func.func @transform_2(%arg0: i32) -> (i32, i32, i32) {
    %c0_i32 = arith.constant 0 : i32
    %c0_i32_0 = arith.constant 0 : i32
    %c0_i32_1 = arith.constant 0 : i32
    return %arg0, %c0_i32, %c0_i32_0 : i32, i32, i32
  }
  func.func @transform_3(%arg0: i32) -> (i32, i32) {
    %c0_i32 = arith.constant 0 : i32
    %c0_i32_0 = arith.constant 0 : i32
    %c0_i32_1 = arith.constant 0 : i32
    return %c0_i32, %c0_i32_0 : i32, i32
  }
  func.func @transform_4(%arg0: i32) -> (i32, i32) {
    %c0_i32 = arith.constant 0 : i32
    %c0_i32_0 = arith.constant 0 : i32
    %c0_i32_1 = arith.constant 0 : i32
    return %c0_i32, %c0_i32_0 : i32, i32
  }
  func.func @transform_5(%arg0: i32) -> (i32, i32) {
    %c0_i32 = arith.constant 0 : i32
    %c0_i32_0 = arith.constant 0 : i32
    %c0_i32_1 = arith.constant 0 : i32
    return %c0_i32, %c0_i32_0 : i32, i32
  }
  func.func @transform_6(%arg0: i32) -> (i32, i32) {
    %c0_i32 = arith.constant 0 : i32
    %c0_i32_0 = arith.constant 0 : i32
    %c0_i32_1 = arith.constant 0 : i32
    return %c0_i32, %c0_i32_0 : i32, i32
  }
  func.func @transform_7(%arg0: i32) -> (i32, i32) {
    %c0_i32 = arith.constant 0 : i32
    %c0_i32_0 = arith.constant 0 : i32
    %c0_i32_1 = arith.constant 0 : i32
    return %c0_i32, %c0_i32_0 : i32, i32
  }
  func.func @transform_8(%arg0: i32) -> (i32, i32) {
    %c0_i32 = arith.constant 0 : i32
    %c0_i32_0 = arith.constant 0 : i32
    %c0_i32_1 = arith.constant 0 : i32
    return %c0_i32, %c0_i32_0 : i32, i32
  }
  func.func @transform_9(%arg0: i32) -> (i32, i32) {
    %c0_i32 = arith.constant 0 : i32
    %c0_i32_0 = arith.constant 0 : i32
    %c0_i32_1 = arith.constant 0 : i32
    return %c0_i32, %c0_i32_0 : i32, i32
  }
  func.func @transform_10(%arg0: i32) -> (i32, i32) {
    %c0_i32 = arith.constant 0 : i32
    %c0_i32_0 = arith.constant 0 : i32
    %c0_i32_1 = arith.constant 0 : i32
    return %c0_i32, %c0_i32_0 : i32, i32
  }
  func.func @transform_11(%arg0: i32) -> (i32, i32) {
    %c0_i32 = arith.constant 0 : i32
    %c0_i32_0 = arith.constant 0 : i32
    %c0_i32_1 = arith.constant 0 : i32
    return %c0_i32, %c0_i32_0 : i32, i32
  }
  func.func @transform_12(%arg0: i32) -> (i32, i32) {
    %c0_i32 = arith.constant 0 : i32
    %c0_i32_0 = arith.constant 0 : i32
    %c0_i32_1 = arith.constant 0 : i32
    return %c0_i32, %c0_i32_0 : i32, i32
  }
  func.func @transform_13(%arg0: i32) -> (i32, i32) {
    %c0_i32 = arith.constant 0 : i32
    %c0_i32_0 = arith.constant 0 : i32
    %c0_i32_1 = arith.constant 0 : i32
    return %c0_i32, %c0_i32_0 : i32, i32
  }
  func.func @transform_14(%arg0: i32) -> (i32, i32, i32) {
    %c0_i32 = arith.constant 0 : i32
    %c0_i32_0 = arith.constant 0 : i32
    %c0_i32_1 = arith.constant 0 : i32
    return %arg0, %c0_i32, %c0_i32_0 : i32, i32, i32
  }
}

</mosaic_0001>

<bundles_post_ra>
// kernel: without_mol_forward.1
= control target key start
LH: loop header
LB: loop body
LE: loop exit
PB: predicated region body
PF: predicated region fallthrough
CT: control target
= control target key end

     0   :  { %s6164_s0 = inlined_call_operand.vmem [shape: f32[2,16,16], index: 0, kind: input, shape index: {}]   ;;  %s6165_s1 = inlined_call_operand.hbm [shape: f32[2,16,128], index: 1, kind: input, shape index: {}]   ;;  %s6166_s2 = inlined_call_operand.vmem [shape: f32[2,1,640], index: 2, kind: input, shape index: {}]   ;;  %s6167_s3 = inlined_call_operand.vmem [shape: bf16[128,128], index: 3, kind: input, shape index: {}]   ;;  %s6168_s4 = inlined_call_operand.vmem [shape: f32[1,128], index: 4, kind: input, shape index: {}]   ;;  %s6169_s5 = inlined_call_operand.hbm [shape: bf16[128,640], index: 5, kind: input, shape index: {}]   ;;  %s6170_s6 = inlined_call_operand.hbm [shape: bf16[640,640], index: 6, kind: input, shape index: {}]   ;;  %s6171_s7 = inlined_call_operand.vmem [shape: f32[1,640], index: 7, kind: input, shape index: {}]   ;;  %s6172_s8 = inlined_call_operand.hbm [shape: bf16[640,256], index: 8, kind: input, shape index: {}]   ;;  %s6173_s9 = inlined_call_operand.vmem [shape: f32[1,256], index: 9, kind: input, shape index: {}]   ;;  %s6174_s10 = inlined_call_operand.hbm [shape: bf16[256,128], index: 10, kind: input, shape index: {}]   ;;  %s6175_s11 = inlined_call_operand.vmem [shape: f32[1,128], index: 11, kind: input, shape index: {}]   ;;  %s6176_s12 = inlined_call_operand.vmem [shape: bf16[128,1], index: 12, kind: input, shape index: {}]   ;;  %s6177_s13 = inlined_call_operand.<no memory space> [shape: f32[1,1], index: 13, kind: input, shape index: {}]   ;;  %s6178_s14 = inlined_call_operand.vmem [shape: f32[2,1,1], index: 14, kind: output, shape index: {}]  }
   0x1   :  { %6181 = sst [smem:[#allocation14_spill]] %s6169_s5  ;;  %v19_v0 = vstv %s6177_s13 }
   0x2   :  { %6182 = sst [smem:[#allocation15_spill]] %s6172_s8  ;;  %20 = vst [vmem:[#allocation2] sm:$0x1] %v19_v0 }
   0x3   :  { %6183 = sst [smem:[#allocation16_spill]] %s6175_s11 }
   0x4   :  { %6184 = sst [smem:[#allocation17_spill]] %s6178_s14 }
   0x5   :  { %21 = vsyncpa [#allocation4], 0 }
   0x6   :  { %23 = vsyncpa [#allocation4 + $0x1], 0 }
   0x7   :  { %24 = vsyncpa [#allocation6], 0 }
   0x8   :  { %25 = vsyncpa [#allocation9], 0  ;;  %s5832_s15 = smov 0   ;;  %s5834_s16 = smov 0  }
   0x9   :  { %s5836_s17 = smov 0   ;;  %s5838_s18 = smov 0  }
   0xa LB: > { %s5851_s13 = sadd.s32 4294967295, %s5742_s18   ;;  %p77_p0 = scmp.ne.s32.totalorder %s5734_s16, %s5730_s15  ;;  %s5742_s18 = sphi %s5838_s18, %s6198_s18   ;;  %s5738_s17 = sphi %s5836_s17, %s6197_s17   ;;  %s5734_s16 = sphi %s5834_s16, %s6196_s16   ;;  %s5730_s15 = sphi %s5832_s15, %s6195_s15  }
   0xb   : > { %p78_p1 = scmp.eq.s32.totalorder %s5851_s13, 0  ;;  %p3679_p2 = scmp.ge.s32.totalorder %s5742_s18, 1 }
   0xc   : > { %p371_p3 = scmp.lt.s32.totalorder %s5742_s18, 3  ;;  %s6186_s5 = sld [smem:[#allocation14_spill]] }
   0xd   : > { %p5859_p4 = por %p78_p1, %p77_p0  ;;  %s5744_s24 = smov [#allocation5]  }
   0xe   : > { %p5866_p5 = pnand %p3679_p2, %p371_p3  ;;  %s390_s25 = sshll.u32 %s5744_s24, 4  ;;  %s391_s25 = int_to_ptr.vmem [resolvable:$true] %s390_s25 }
   0xf   : > { %s6189_s8 = sld [smem:[#allocation15_spill]]  ;;  %s5745_s30 = smov 320  }
  0x10   : > { %p5481_p6 = pneg %p5866_p5  ;;  %s5746_s15 = smov 20  }
  0x11   : > { %s5747_s20 = smov [#allocation8]   ;;  %s6179_s24 = smov 128  }
  0x12   : > { %s388_s22 = sshll.u32 %s6186_s5, 4  ;;  %p5874_p7 = pnand %p5481_p6, %p78_p1  ;;  %s389_s22 = int_to_ptr.hbm [resolvable:$true] %s388_s22 }
  0x13   : > { %s421_s21 = sshll.u32 %s5747_s20, 4  ;;  %s6180_s5 = smov 8   ;;  %s422_s21 = int_to_ptr.vmem [resolvable:$true] %s421_s21 }
  0x14   : > { %5484 = dma.hbm_to_vmem [thread:$0]  (!%p5874_p7), %s389_s22, 5120, %s391_s25, [#allocation6], %s5745_s30, %s5745_s30, %s5746_s15  }
  0x15   : > { %s419_s29 = sshll.u32 %s6189_s8, 4  ;;  %s402_s8 = sshll.u32 %s6170_s6, 4  ;;  %s420_s29 = int_to_ptr.hbm [resolvable:$true] %s419_s29  ;;  %s403_s8 = int_to_ptr.hbm [resolvable:$true] %s402_s8 }
  0x16   : > { %5490 = dma.hbm_to_vmem [thread:$0]  (!%p5874_p7), %s420_s29, 10240, %s422_s21, [#allocation9], %s6179_s24, %s6179_s24, %s6180_s5  }
  0x17   : > { %s5750_s22 = smov [#allocation7]   ;;  %s436_s11 = sshll.u32 %s6174_s10, 4  ;;  %s437_s11 = int_to_ptr.hbm [resolvable:$true] %s436_s11 }
  0x18   : > { %s404_s25 = sshll.u32 %s5750_s22, 4  ;;  %s5751_s29 = smov [#allocation10]   ;;  %s405_s25 = int_to_ptr.vmem [resolvable:$true] %s404_s25 }
  0x19   : > { %5487 = dma.hbm_to_vmem [thread:$0]  (!%p5874_p7), %s403_s8, 25600, %s405_s25, [#allocation6], %s5745_s30, %s5745_s30, %s5746_s15  }
  0x1a   : > { %s438_s21 = sshll.u32 %s5751_s29, 4  ;;  %s5752_s27 = smov 64   ;;  %s439_s21 = int_to_ptr.vmem [resolvable:$true] %s438_s21 }
  0x1b   : > { %s5753_s28 = smov 4   ;;  %s5899_s22 = sadd.s32 1, %s5742_s18  }
  0x1c   : > { %5493 = dma.hbm_to_vmem [thread:$0]  (!%p5874_p7), %s437_s11, 2048, %s439_s21, [#allocation9], %s5752_s27, %s5752_s27, %s5753_s28  }
  0x1d   : > { %s61_s24 = ssub.s32 %s5742_s18, %s5899_s22  ;;  %s64_s14 = sadd.s32 1, %s5738_s17 }
  0x1e   : > { %p62_p8 = scmp.eq.s32.totalorder %s61_s24, 0  ;;  %p71_p9 = scmp.ne.s32.totalorder %s5738_s17, %s5734_s16 }
  0x1f   : > { %p72_p10 = scmp.eq.s32.totalorder %s5742_s18, 0  ;;  %s469_s30 = sand.u32 1, %s5738_s17  }
  0x20   : > { %s5908_s8 = scalar_select %p62_p8, %s5738_s17, %s64_s14  }
  0x21   : > { %p73_p11 = por %p72_p10, %p71_p9  ;;  %s5108_s15 = sshll.u32 %s5742_s18, 4 }
  0x22   : > { %p5502_p12 = scmp.lt.s32.totalorder %s5742_s18, 2  ;;  %s3685_s25 = sshll.u32 %s469_s30, 4 }
  0x23   : > { %s478_s26 = scalar_lea.hbm %s6165_s1, %s5108_s15  ;;  %s473_s21 = scalar_lea.vmem [#allocation3], %s3685_s25 }
  0x24   : > { %s479_s11 = sshll.u32 %s478_s26, 4  ;;  %s481_s27 = sshll.u32 %s473_s21, 4  ;;  %s480_s11 = int_to_ptr.hbm [resolvable:$true] %s479_s11  ;;  %s482_s27 = int_to_ptr.vmem [resolvable:$true] %s481_s27 }
  0x25   : > { %p5916_p13 = pnand %p5502_p12, %p73_p11  ;;  %s470_s28 = scalar_lea.sflag [#allocation4], %s469_s30 }
  0x26   : > { %s5670_s14 = sshra.s32 %s480_s11, 4  ;;  %s5677_s25 = scalar_lea.hbm %s6165_s1, 32  ;;  %s5671_s14 = int_to_ptr.hbm [resolvable:$true] %s5670_s14 }
  0x27   : > { %s5672_s5 = scalar_lea.hbm %s5671_s14, 16  ;;  %p5674_p2 = pneg %p5916_p13 }
  0x28   : > { %p5673_p0 = scmp.ne.s32.totalorder %s5671_s14, %s5672_s5  ;;  %p5678_p7 = scmp.lt.s32.totalorder %s5671_s14, %s6165_s1 }
  0x29   : > { %p5679_p8 = scmp.lt.s32.totalorder %s5677_s25, %s5672_s5 }
  0x2a   : > { %p5675_p3 = pnand %p5674_p2, %p5673_p0 }
  0x2b   : > { %p5680_p9 = por %p5679_p8, %p5678_p7 }
  0x2c   : > { %p5676_p6 = pneg %p5675_p3 }
  0x2e   : > { %p5681_p10 = pnand %p5680_p9, %p5676_p6 }
  0x30   : > { %5684 = shalt.err (!%p5681_p10)
}
  0x31   : > { %s6191_s30 = smov 8   ;;  %s6192_s26 = smov 128  }
  0x32   : > { %5497 = dma.hbm_to_vmem [thread:$0]  (!%p5916_p13), %s480_s11, 256, %s482_s27, %s470_s28, %s6192_s26, %s6192_s26, %s6191_s30  }
  0x33   : > { %500 = sbr.rel (%p5866_p5) target bundleno = 1148 (0x47c), region = 76  ;;  %s502_s21 = sand.u32 (!%p5866_p5), 1, %s5734_s16  }
  0x34   : > { %s3689_s18 = sshll.u32 (!%p5866_p5), %s502_s21, 4  ;;  %s503_s15 = scalar_lea.sflag (!%p5866_p5), [#allocation4], %s502_s21 }
  0x35   : > { %s506_s20 = scalar_lea.vmem (!%p5866_p5), [#allocation3], %s3689_s18 }
  0x38   : > { %5717 = dma.done.wait (%p5859_p4), %s503_s15, 256  }
  0x39   : > { %5719 = vsyncadd (%p5859_p4), %s503_s15, 4294967040 }
  0x3a   : > { %5721 = dma.done.wait (%p78_p1), [#allocation6], 30720  }
  0x3b   : > { %5723 = vsyncadd (%p78_p1), [#allocation6], 4294936576 }
  0x3c   : > { %5725 = dma.done.wait (%p78_p1), [#allocation9], 12288  }
  0x3d   : > { %5727 = vsyncadd (%p78_p1), [#allocation9], 4294955008  ;;  %p579_p5 = scmp.lt.s32.totalorder %s5851_s13, 1  ;;  %v595_v1 = vld [vmem:[%s506_s20] sm:$0xff]  ;;  %v596_v2 = vld [vmem:[%s506_s20 + $0x8] sm:$0xff]  ;;  %vm598_vm0 = vcmask 130048  }
  0x3e   : > { %v597_v4 = vpack.c.bf16 %v596_v2, %v595_v1  ;;  %v5117_v7 = vld [vmem:[%s6167_s3 + $0x38] sm:$0xff]  ;;  %v5116_v11 = vld [vmem:[%s6167_s3 + $0x30] sm:$0xff]  ;;  %v5115_v12 = vld [vmem:[%s6167_s3 + $0x28] sm:$0xff]  ;;  %vm3555_vm1 = vcmask 0  }
  0x3f   : > { %s6200_s13 = smov (!%p579_p5, %s5851_s13), 1  ;;  %685 = vmatpush.bf16.msra.mxu1 %v5117_v7  ;;  %v5114_v13 = vld [vmem:[%s6167_s3 + $0x20] sm:$0xff]  ;;  %v5113_v14 = vld [vmem:[%s6167_s3 + $0x18] sm:$0xff]  ;;  %v5112_v15 = vld [vmem:[%s6167_s3 + $0x10] sm:$0xff] }
  0x40   : > { %s5109_s5 = sshll.u32 %s6200_s13, 4  ;;  %609 = vmatpush.bf16.msra.mxu0 %v597_v4  ;;  %v5111_v16 = vld [vmem:[%s6167_s3 + $0x8] sm:$0xff]  ;;  %v5110_v17 = vld [vmem:[%s6167_s3] sm:$0xff]  ;;  %v3872_v18 = vld [vmem:[#allocation7 + $0x118] sm:$0xf]  ;;  %s5462_s27 = smul.u32 5, %s6200_s13 }
  0x41   : > { %s583_s11 = scalar_lea.vmem %s6164_s0, %s5109_s5  ;;  %v5195_v19 = vld [vmem:[#allocation7 + $0x128] sm:$0xf0]  ;;  %v3852_v20 = vld [vmem:[#allocation7 + $0xf0] sm:$0xf]  ;;  %v5190_v22 = vld [vmem:[#allocation7 + $0x100] sm:$0xf0] }
  0x42   : > { %v592_v3 = vld [vmem:[%s583_s11] sm:$0xff]  ;;  %v593_v5 = vld [vmem:[%s583_s11 + $0x8] sm:$0xff]  ;;  %v3873_v21 = vor.u32 %v5195_v19, %v3872_v18  ;;  %v4032_v23 = vld [vmem:[#allocation7 + $0x258] sm:$0xf]  ;;  %v3853_v27 = vor.u32 %v5190_v22, %v3852_v20  ;;  %s587_s14 = scalar_lea.vmem %s6166_s2, %s5462_s27  ;;  %s6193_s5 = sld [smem:[#allocation16_spill]] }
  0x43   : > { %v701_v6 = vsel %vm598_vm0, %v592_v3, 0.0  ;;  %v594_v8 = vpack.c.bf16 %v593_v5, %v592_v3  ;;  %v702_v9 = vsel %vm598_vm0, %v593_v5, 0.0  ;;  %686 = vmatpush.bf16.msra.mxu1 %v5116_v11  ;;  %v5235_v24 = vld [vmem:[#allocation7 + $0x268] sm:$0xf0]  ;;  %v4012_v26 = vld [vmem:[#allocation7 + $0x230] sm:$0xf] }
  0x44   : > { %v5961_v10 = vadd.f32 %v702_v9, %v701_v6  ;;  %v4033_v25 = vor.u32 %v5235_v24, %v4032_v23  ;;  %2075 = vmatpush.bf16.msra.mxu3 %v3873_v21  ;;  %v5230_v28 = vld [vmem:[#allocation7 + $0x240] sm:$0xf0]  ;;  %v3832_v29 = vld [vmem:[#allocation7 + $0xc8] sm:$0xf]  ;;  %v5185_v30 = vld [vmem:[#allocation7 + $0xd8] sm:$0xf0] }
  0x45   : > { %3696 = vmatmul.msk.bf16.vlgmr.msra.gmra.mxu0 %vm598_vm0, %v594_v8  ;;  %v4013_v31 = vor.u32 %v5230_v28, %v4012_v26  ;;  %v4352_v32 = vld [vmem:[#allocation7 + $0x4d8] sm:$0xf]  ;;  %v3992_v33 = vld [vmem:[#allocation7 + $0x208] sm:$0xf]  ;;  %v5225_v34 = vld [vmem:[#allocation7 + $0x218] sm:$0xf0]  ;;  %v3833_v38 = vor.u32 %v5185_v30, %v3832_v29 }
  0x46   : > { %2088 = vmatpush.bf16.msrb.mxu0 %v4033_v25  ;;  %v5315_v35 = vld [vmem:[#allocation7 + $0x4e8] sm:$0xf0]  ;;  %v4332_v37 = vld [vmem:[#allocation7 + $0x4b0] sm:$0xf]  ;;  %v5310_v39 = vld [vmem:[#allocation7 + $0x4c0] sm:$0xf0]  ;;  %v3993_v42 = vor.u32 %v5225_v34, %v3992_v33 }
  0x47   : > { %687 = vmatpush.bf16.msra.mxu1 %v5115_v12  ;;  %v4353_v36 = vor.u32 %v5315_v35, %v4352_v32  ;;  %v3812_v40 = vld [vmem:[#allocation7 + $0xa0] sm:$0xf]  ;;  %v5180_v41 = vld [vmem:[#allocation7 + $0xb0] sm:$0xf0]  ;;  %v4333_v44 = vor.u32 %v5310_v39, %v4332_v37  ;;  %v4312_v46 = vld [vmem:[#allocation7 + $0x488] sm:$0xf] }
  0x48   : > { %2076 = vmatpush.bf16.msra.mxu3 %v3853_v27  ;;  %v3972_v43 = vld [vmem:[#allocation7 + $0x1e0] sm:$0xf]  ;;  %v5220_v45 = vld [vmem:[#allocation7 + $0x1f0] sm:$0xf0]  ;;  %v5305_v47 = vld [vmem:[#allocation7 + $0x498] sm:$0xf0]  ;;  %v3813_v48 = vor.u32 %v5180_v41, %v3812_v40 }
  0x49   : > { %v3792_v49 = vld [vmem:[#allocation7 + $0x78] sm:$0xf]  ;;  %v5175_v50 = vld [vmem:[#allocation7 + $0x88] sm:$0xf0]  ;;  %v3973_v51 = vor.u32 %v5220_v45, %v3972_v43  ;;  %v4313_v53 = vor.u32 %v5305_v47, %v4312_v46  ;;  %v4292_v55 = vld [vmem:[#allocation7 + $0x460] sm:$0xf] }
  0x4a   : > { %2089 = vmatpush.bf16.msrb.mxu0 %v4013_v31  ;;  %v3952_v52 = vld [vmem:[#allocation7 + $0x1b8] sm:$0xf]  ;;  %v5215_v54 = vld [vmem:[#allocation7 + $0x1c8] sm:$0xf0]  ;;  %v5300_v56 = vld [vmem:[#allocation7 + $0x470] sm:$0xf0]  ;;  %v3793_v57 = vor.u32 %v5175_v50, %v3792_v49 }
  0x4b   : > { %688 = vmatpush.bf16.msra.mxu1 %v5114_v13  ;;  %v3772_v58 = vld [vmem:[#allocation7 + $0x50] sm:$0xf]  ;;  %v5170_v59 = vld [vmem:[#allocation7 + $0x60] sm:$0xf0]  ;;  %v3953_v60 = vor.u32 %v5215_v54, %v3952_v52  ;;  %v4293_v62 = vor.u32 %v5300_v56, %v4292_v55  ;;  %v4272_v0 = vld [vmem:[#allocation7 + $0x438] sm:$0xf] }
  0x4c   : > { %2077 = vmatpush.bf16.msra.mxu3 %v3833_v38  ;;  %v3932_v61 = vld [vmem:[#allocation7 + $0x190] sm:$0xf]  ;;  %v5210_v63 = vld [vmem:[#allocation7 + $0x1a0] sm:$0xf0]  ;;  %v5295_v1 = vld [vmem:[#allocation7 + $0x448] sm:$0xf0]  ;;  %v3773_v2 = vor.u32 %v5170_v59, %v3772_v58 }
  0x4d   : > { %v3752_v3 = vld [vmem:[#allocation7 + $0x28] sm:$0xf]  ;;  %v5165_v4 = vld [vmem:[#allocation7 + $0x38] sm:$0xf0]  ;;  %v3933_v5 = vor.u32 %v5210_v63, %v3932_v61  ;;  %v4273_v7 = vor.u32 %v5295_v1, %v4272_v0  ;;  %v4252_v11 = vld [vmem:[#allocation7 + $0x410] sm:$0xf] }
  0x4e   : > { %2090 = vmatpush.bf16.msrb.mxu0 %v3993_v42  ;;  %v3912_v6 = vld [vmem:[#allocation7 + $0x168] sm:$0xf]  ;;  %v5205_v9 = vld [vmem:[#allocation7 + $0x178] sm:$0xf0]  ;;  %v5290_v12 = vld [vmem:[#allocation7 + $0x420] sm:$0xf0]  ;;  %v3753_v13 = vor.u32 %v5165_v4, %v3752_v3 }
  0x4f   : > { %689 = vmatpush.bf16.msra.mxu1 %v5113_v14  ;;  %v5989_v14 = vld [vmem:[%s587_s14] sm:$0x1f]  ;;  %v4253_v18 = vor.u32 %v5290_v12, %v4252_v11  ;;  %v4512_v19 = vld [vmem:[#allocation7 + $0x618] sm:$0xf]  ;;  %v5355_v20 = vld [vmem:[#allocation7 + $0x628] sm:$0xf0] }
  0x50   : > { %2078 = vmatpush.bf16.msra.mxu3 %v3813_v48  ;;  %v3892_v21 = vld [vmem:[#allocation7 + $0x140] sm:$0xf]  ;;  %v5200_v22 = vld [vmem:[#allocation7 + $0x150] sm:$0xf0]  ;;  %v4232_v23 = vld [vmem:[#allocation7 + $0x3e8] sm:$0xf]  ;;  %v4513_v28 = vor.u32 %v5355_v20, %v4512_v19 }
  0x51   : > { %v5285_v24 = vld [vmem:[#allocation7 + $0x3f8] sm:$0xf0]  ;;  %v3874_v27 = vld [vmem:[#allocation7 + $0x12c] sm:$0xf0]  ;;  %v780_v29 = vperm.slane %v5989_v14, 0  ;;  %v3893_v31 = vor.u32 %v5200_v22, %v3892_v21  ;;  %s6194_s11 = sld [smem:[#allocation17_spill]] }
  0x52   : > { %2091 = vmatpush.bf16.msrb.mxu0 %v3973_v51  ;;  %v5193_v26 = vld [vmem:[#allocation7 + $0x11c] sm:$0xf]  ;;  %v4492_v32 = vld [vmem:[#allocation7 + $0x5f0] sm:$0xf]  ;;  %v5350_v33 = vld [vmem:[#allocation7 + $0x600] sm:$0xf0]  ;;  %v4233_v35 = vor.u32 %v5285_v24, %v4232_v23 }
  0x53   : > { %690 = vmatpush.bf16.msra.mxu1 %v5112_v15  ;;  %v3732_v15 = vld [vmem:[#allocation7] sm:$0xf]  ;;  %v5188_v34 = vld [vmem:[#allocation7 + $0xf4] sm:$0xf]  ;;  %v3877_v37 = vor.u32 %v5193_v26, %v3874_v27  ;;  %v3854_v38 = vld [vmem:[#allocation7 + $0x104] sm:$0xf0]  ;;  %v5992_v41 = vpack.c.bf16 %v780_v29, %v780_v29  ;;  %v4493_v45 = vor.u32 %v5350_v33, %v4492_v32 }
  0x54   : > { %2079 = vmatpush.bf16.msra.mxu3 %v3793_v57  ;;  %v4212_v39 = vld [vmem:[#allocation7 + $0x3c0] sm:$0xf]  ;;  %v5280_v40 = vld [vmem:[#allocation7 + $0x3d0] sm:$0xf0]  ;;  %v5273_v42 = vld [vmem:[#allocation7 + $0x39c] sm:$0xf]  ;;  %v3857_v50 = vor.u32 %v5188_v34, %v3854_v38 }
  0x55   : > { %v4194_v43 = vld [vmem:[#allocation7 + $0x3ac] sm:$0xf0]  ;;  %v4472_v46 = vld [vmem:[#allocation7 + $0x5c8] sm:$0xf]  ;;  %v5345_v47 = vld [vmem:[#allocation7 + $0x5d8] sm:$0xf0]  ;;  %v4213_v48 = vor.u32 %v5280_v40, %v4212_v39 }
  0x56   : > { %2092 = vmatpush.bf16.msrb.mxu0 %v3953_v60  ;;  %v5183_v51 = vld [vmem:[#allocation7 + $0xcc] sm:$0xf]  ;;  %v4197_v52 = vor.u32 %v5273_v42, %v4194_v43  ;;  %v5268_v54 = vld [vmem:[#allocation7 + $0x374] sm:$0xf]  ;;  %v4174_v55 = vld [vmem:[#allocation7 + $0x384] sm:$0xf0]  ;;  %v4473_v56 = vor.u32 %v5345_v47, %v4472_v46 }
  0x57   : > { %691 = vmatpush.bf16.msra.mxu1 %v5111_v16  ;;  %v5160_v16 = vld [vmem:[#allocation7 + $0x10] sm:$0xf0]  ;;  %v4452_v57 = vld [vmem:[#allocation7 + $0x5a0] sm:$0xf]  ;;  %v5178_v60 = vld [vmem:[#allocation7 + $0xa4] sm:$0xf]  ;;  %v4177_v61 = vor.u32 %v5268_v54, %v4174_v55  ;;  %s590_s27 = scalar_lea.vmem %s6194_s11, %s6200_s13 }
  0x58   : > { %2080 = vmatpush.bf16.msra.mxu3 %v3773_v2  ;;  %v3733_v25 = vor.u32 %v5160_v16, %v3732_v15  ;;  %v5340_v58 = vld [vmem:[#allocation7 + $0x5b0] sm:$0xf0]  ;;  %v5263_v63 = vld [vmem:[#allocation7 + $0x34c] sm:$0xf]  ;;  %v4154_v0 = vld [vmem:[#allocation7 + $0x35c] sm:$0xf0] }
  0x59   : > { %v4453_v1 = vor.u32 %v5340_v58, %v4452_v57  ;;  %v4432_v2 = vld [vmem:[#allocation7 + $0x578] sm:$0xf]  ;;  %v5335_v3 = vld [vmem:[#allocation7 + $0x588] sm:$0xf0]  ;;  %v4412_v12 = vld [vmem:[#allocation7 + $0x550] sm:$0xf] }
  0x5a   : > { %2093 = vmatpush.bf16.msrb.mxu0 %v3933_v5  ;;  %v5173_v5 = vld [vmem:[#allocation7 + $0x7c] sm:$0xf]  ;;  %v4433_v11 = vor.u32 %v5335_v3, %v4432_v2  ;;  %v5168_v16 = vld [vmem:[#allocation7 + $0x54] sm:$0xf]  ;;  %v4114_v20 = vld [vmem:[#allocation7 + $0x30c] sm:$0xf0] }
  0x5b   : > { %692 = vmatpush.bf16.msra.mxu1 %v5110_v17  ;;  %v3913_v17 = vor.u32 %v5205_v9, %v3912_v6  ;;  %v4157_v6 = vor.u32 %v5263_v63, %v4154_v0  ;;  %v4134_v9 = vld [vmem:[#allocation7 + $0x334] sm:$0xf0]  ;;  %v5253_v19 = vld [vmem:[#allocation7 + $0x2fc] sm:$0xf]  ;;  %v4392_v22 = vld [vmem:[#allocation7 + $0x528] sm:$0xf] }
  0x5c   : > { %2081 = vmatpush.bf16.msra.mxu3 %v3753_v13  ;;  %v5330_v13 = vld [vmem:[#allocation7 + $0x560] sm:$0xf0]  ;;  %v5325_v23 = vld [vmem:[#allocation7 + $0x538] sm:$0xf0]  ;;  %v4117_v26 = vor.u32 %v5253_v19, %v4114_v20  ;;  %v3754_v27 = vld [vmem:[#allocation7 + $0x3c] sm:$0xf0] }
  0x5d   : > { %v4413_v21 = vor.u32 %v5330_v13, %v4412_v12  ;;  %v4094_v29 = vld [vmem:[#allocation7 + $0x2e4] sm:$0xf0]  ;;  %v5320_v32 = vld [vmem:[#allocation7 + $0x510] sm:$0xf0]  ;;  %v5313_v34 = vld [vmem:[#allocation7 + $0x4dc] sm:$0xf] }
  0x5e   : > { %2094 = vmatpush.bf16.msrb.mxu0 %v3913_v17  ;;  %v3734_v38 = vld [vmem:[#allocation7 + $0x14] sm:$0xf0]  ;;  %v5353_v40 = vld [vmem:[#allocation7 + $0x61c] sm:$0xf]  ;;  %v4514_v42 = vld [vmem:[#allocation7 + $0x62c] sm:$0xf0] }
  0x5f   : > { %2114 = vmatpush.bf16.msrb.mxu1 %v4353_v36  ;;  %v4334_v46 = vld [vmem:[#allocation7 + $0x4c4] sm:$0xf0]  ;;  %v4517_v47 = vor.u32 %v5353_v40, %v4514_v42  ;;  %v4074_v57 = vld [vmem:[#allocation7 + $0x2bc] sm:$0xf0]  ;;  %v5238_v0 = vld [vmem:[#allocation7 + $0x284] sm:$0xf] }
  0x60   : > { %2082 = vmatpush.bf16.msra.mxu3 %v3733_v25  ;;  %v5163_v25 = vld [vmem:[#allocation7 + $0x2c] sm:$0xf]  ;;  %v4474_v63 = vld [vmem:[#allocation7 + $0x5dc] sm:$0xf0]  ;;  %v5288_v20 = vld [vmem:[#allocation7 + $0x414] sm:$0xf] }
  0x61   : > { %v3757_v33 = vor.u32 %v5163_v25, %v3754_v27  ;;  %v5226_v27 = vld [vmem:[#allocation7 + $0x220] sm:$0xf0]  ;;  %v4214_v40 = vld [vmem:[#allocation7 + $0x3d4] sm:$0xf0]  ;;  %v5323_v42 = vld [vmem:[#allocation7 + $0x52c] sm:$0xf] }
  0x62   : > { %2095 = vmatpush.bf16.msrb.mxu0 %v3893_v31  ;;  %v4372_v31 = vld [vmem:[#allocation7 + $0x500] sm:$0xf] }
  0x63   : > { %2115 = vmatpush.bf16.msrb.mxu1 %v4333_v44  ;;  %v781_v44 = vperm.slane %v5989_v14, 1  ;;  %2083 = vmatmul.bf16.vlgmr.msra.gmra.mxu3 %v5992_v41  ;;  %v4373_v39 = vor.u32 %v5320_v32, %v4372_v31  ;;  %v5328_v31 = vld [vmem:[#allocation7 + $0x554] sm:$0xf] }
  0x64   : > { %2127 = vmatpush.bf16.msrb.mxu3 %v4513_v28  ;;  %v5248_v28 = vld [vmem:[#allocation7 + $0x2d4] sm:$0xf] }
  0x65   : > { %v5995_v49 = vpack.c.bf16 %v781_v44, %v781_v44 }
  0x66   : > { %2140 = vmatpush.bf16.msra.mxu0 %v3877_v37  ;;  %v5158_v37 = vld [vmem:[#allocation7 + $0x4] sm:$0xf] }
  0x67   : > { %2116 = vmatpush.bf16.msrb.mxu1 %v4313_v53  ;;  %v3834_v53 = vld [vmem:[#allocation7 + $0xdc] sm:$0xf0]  ;;  %2096 = vmatmul.bf16.vlgmr.msrb.gmra.mxu0 %v5995_v49  ;;  %v3737_v44 = vor.u32 %v5158_v37, %v3734_v38  ;;  %v704_v37 = vrot.slane %v5961_v10, 4 }
  0x68   : > { %2128 = vmatpush.bf16.msrb.mxu3 %v4493_v45  ;;  %v3837_v59 = vor.u32 %v5183_v51, %v3834_v53  ;;  %v5308_v45 = vld [vmem:[#allocation7 + $0x4b4] sm:$0xf]  ;;  %v4314_v53 = vld [vmem:[#allocation7 + $0x49c] sm:$0xf0] }
  0x69   : > { %v4337_v51 = vor.u32 %v5308_v45, %v4334_v46  ;;  %v784_v46 = vperm.slane %v5989_v14, 4 }
  0x6a   : > { %2141 = vmatpush.bf16.msra.mxu0 %v3857_v50  ;;  %v4494_v50 = vld [vmem:[#allocation7 + $0x604] sm:$0xf0] }
  0x6b   : > { %2117 = vmatpush.bf16.msrb.mxu1 %v4293_v62  ;;  %v3814_v62 = vld [vmem:[#allocation7 + $0xb4] sm:$0xf0] }
  0x6c   : > { %2129 = vmatpush.bf16.msrb.mxu3 %v4473_v56  ;;  %v3817_v4 = vor.u32 %v5178_v60, %v3814_v62  ;;  %v5243_v56 = vld [vmem:[#allocation7 + $0x2ac] sm:$0xf]  ;;  %v4294_v60 = vld [vmem:[#allocation7 + $0x474] sm:$0xf0] }
  0x6d   : > { %v4077_v58 = vor.u32 %v5243_v56, %v4074_v57  ;;  %v5318_v56 = vld [vmem:[#allocation7 + $0x504] sm:$0xf]  ;;  %v4374_v57 = vld [vmem:[#allocation7 + $0x514] sm:$0xf0] }
  0x6e   : > { %2142 = vmatpush.bf16.msra.mxu0 %v3837_v59  ;;  %v5298_v59 = vld [vmem:[#allocation7 + $0x464] sm:$0xf] }
  0x6f   : > { %2118 = vmatpush.bf16.msrb.mxu1 %v4273_v7  ;;  %v3794_v7 = vld [vmem:[#allocation7 + $0x8c] sm:$0xf0]  ;;  %v4297_v62 = vor.u32 %v5298_v59, %v4294_v60  ;;  %v4180_v59 = vld [vmem:[#allocation7 + $0x378] sm:$0xf]  ;;  %v5271_v60 = vld [vmem:[#allocation7 + $0x388] sm:$0xf0] }
  0x70   : > { %2130 = vmatpush.bf16.msrb.mxu3 %v4453_v1  ;;  %v3797_v15 = vor.u32 %v5173_v5, %v3794_v7  ;;  %v4054_v1 = vld [vmem:[#allocation7 + $0x294] sm:$0xf0]  ;;  %v4040_v5 = vld [vmem:[#allocation7 + $0x260] sm:$0xf] }
  0x71   : > { %v4057_v3 = vor.u32 %v5238_v0, %v4054_v1  ;;  %v4181_v0 = vor.u32 %v5271_v60, %v4180_v59  ;;  %v4080_v60 = vld [vmem:[#allocation7 + $0x2b0] sm:$0xf] }
  0x72   : > { %2143 = vmatpush.bf16.msra.mxu0 %v3817_v4  ;;  %v783_v4 = vperm.slane %v5989_v14, 3 }
  0x73   : > { %2119 = vmatpush.bf16.msrb.mxu1 %v4253_v18  ;;  %v3774_v18 = vld [vmem:[#allocation7 + $0x64] sm:$0xf0] }
  0x74   : > { %2131 = vmatpush.bf16.msrb.mxu3 %v4433_v11  ;;  %v3777_v24 = vor.u32 %v5168_v16, %v3774_v18  ;;  %v5338_v11 = vld [vmem:[#allocation7 + $0x5a4] sm:$0xf]  ;;  %v6001_v12 = vpack.c.bf16 %v783_v4, %v783_v4  ;;  %v5231_v18 = vld [vmem:[#allocation7 + $0x248] sm:$0xf0]  ;;  %v4160_v4 = vld [vmem:[#allocation7 + $0x350] sm:$0xf] }
  0x76   : > { %2144 = vmatpush.bf16.msra.mxu0 %v3797_v15  ;;  %v4454_v15 = vld [vmem:[#allocation7 + $0x5b4] sm:$0xf0] }
  0x77   : > { %2120 = vmatpush.bf16.msrb.mxu1 %v4233_v35  ;;  %v4354_v35 = vld [vmem:[#allocation7 + $0x4ec] sm:$0xf0]  ;;  %v4457_v16 = vor.u32 %v5338_v11, %v4454_v15 }
  0x78   : > { %2132 = vmatpush.bf16.msrb.mxu3 %v4413_v21  ;;  %v4357_v43 = vor.u32 %v5313_v34, %v4354_v35  ;;  %v4254_v21 = vld [vmem:[#allocation7 + $0x424] sm:$0xf0] }
  0x79   : > { %v3980_v35 = vld [vmem:[#allocation7 + $0x1e8] sm:$0xf] }
  0x7a   : > { %2145 = vmatpush.bf16.msra.mxu0 %v3777_v24  ;;  %v4434_v24 = vld [vmem:[#allocation7 + $0x58c] sm:$0xf0] }
  0x7b   : > { %2121 = vmatpush.bf16.msrb.mxu1 %v4213_v48  ;;  %v5348_v48 = vld [vmem:[#allocation7 + $0x5f4] sm:$0xf] }
  0x7c   : > { %v4497_v54 = vor.u32 %v5348_v48, %v4494_v50  ;;  %v5276_v48 = vld [vmem:[#allocation7 + $0x3b0] sm:$0xf0] }
  0x7e   : > { %2146 = vmatpush.bf16.msra.mxu0 %v3757_v33  ;;  %v4414_v33 = vld [vmem:[#allocation7 + $0x564] sm:$0xf0] }
  0x7f   : > { %v4417_v34 = vor.u32 %v5328_v31, %v4414_v33  ;;  %v5256_v33 = vld [vmem:[#allocation7 + $0x310] sm:$0xf0] }
  0x82   : > { %2147 = vmatpush.bf16.msra.mxu0 %v3737_v44  ;;  %v4394_v44 = vld [vmem:[#allocation7 + $0x53c] sm:$0xf0] }
  0x83   : > { %v4397_v45 = vor.u32 %v5323_v42, %v4394_v44  ;;  %v5251_v44 = vld [vmem:[#allocation7 + $0x2e8] sm:$0xf0] }
  0x85   : > { %2148 = vmatmul.bf16.vlgmr.msra.gmra.mxu0 %v5992_v41 }
  0x86   : > { %2192 = vmatpush.bf16.msrb.mxu0 %v4517_v47  ;;  %v4200_v47 = vld [vmem:[#allocation7 + $0x3a0] sm:$0xf] }
  0x87   : > { %v4201_v50 = vor.u32 %v5276_v48, %v4200_v47  ;;  %v5296_v47 = vld [vmem:[#allocation7 + $0x450] sm:$0xf0] }
  0x8a   : > { %2193 = vmatpush.bf16.msrb.mxu0 %v4497_v54  ;;  %v6007_v54 = vpack.c.bf16 %v784_v46, %v784_v46 }
  0xc2   : > { %v611_v8 = vpop.f32.mrf.mxu0 }
  0xca   : > { %v613_v30 = vpop.f32.mrf.mxu0 }
  0xcb   : > { %v616_v36 = vpack.c.bf16 %v613_v30, %v611_v8  ;;  %v5258_v8 = vld [vmem:[#allocation7 + $0x324] sm:$0xf]  ;;  %v4393_v30 = vor.u32 %v5325_v23, %v4392_v22  ;;  %v5333_v22 = vld [vmem:[#allocation7 + $0x57c] sm:$0xf]  ;;  %v4257_v23 = vor.u32 %v5288_v20, %v4254_v21  ;;  %v3900_v21 = vld [vmem:[#allocation7 + $0x148] sm:$0xf] }
  0xcc   : > { %v4137_v17 = vor.u32 %v5258_v8, %v4134_v9  ;;  %v5293_v8 = vld [vmem:[#allocation7 + $0x43c] sm:$0xf]  ;;  %v4274_v9 = vld [vmem:[#allocation7 + $0x44c] sm:$0xf0]  ;;  %v4437_v25 = vor.u32 %v5333_v22, %v4434_v24  ;;  %v5306_v20 = vld [vmem:[#allocation7 + $0x4a0] sm:$0xf0] }
  0xcd   : > { %693 = vmatmul.bf16.vlgmr.msra.gmra.mxu1 %v616_v36  ;;  %v4097_v36 = vor.u32 %v5248_v28, %v4094_v29  ;;  %2133 = vmatpush.bf16.msrb.mxu3 %v4393_v30  ;;  %v4277_v13 = vor.u32 %v5293_v8, %v4274_v9  ;;  %v5283_v29 = vld [vmem:[#allocation7 + $0x3ec] sm:$0xf]  ;;  %v4234_v30 = vld [vmem:[#allocation7 + $0x3fc] sm:$0xf0]  ;;  %v3920_v8 = vld [vmem:[#allocation7 + $0x170] sm:$0xf] }
  0xce   : > { %2166 = vmatpush.bf16.msra.mxu1 %v4197_v52  ;;  %v5303_v52 = vld [vmem:[#allocation7 + $0x48c] sm:$0xf]  ;;  %v4237_v32 = vor.u32 %v5283_v29, %v4234_v30  ;;  %v5206_v9 = vld [vmem:[#allocation7 + $0x180] sm:$0xf0]  ;;  %v5201_v22 = vld [vmem:[#allocation7 + $0x158] sm:$0xf0] }
  0xcf   : > { %v4317_v55 = vor.u32 %v5303_v52, %v4314_v53  ;;  %v5216_v52 = vld [vmem:[#allocation7 + $0x1d0] sm:$0xf0]  ;;  %v705_v53 = vadd.f32 %v704_v37, %v5961_v10  ;;  %v3921_v15 = vor.u32 %v5206_v9, %v3920_v8  ;;  %v5549_v37 = vld [vmem:[%s6168_s4] ss:$0 sm:$0xff]  ;;  %v5270_v8 = vld [vmem:[#allocation7 + $0x380] sm:$0xf0] }
  0xd1   : > { %2134 = vmatpush.bf16.msrb.mxu3 %v4373_v39  ;;  %v5278_v39 = vld [vmem:[#allocation7 + $0x3c4] sm:$0xf]  ;;  %v706_v10 = vrot.slane %v705_v53, 2 }
  0xd2   : > { %2167 = vmatpush.bf16.msra.mxu1 %v4177_v61  ;;  %v5343_v61 = vld [vmem:[#allocation7 + $0x5cc] sm:$0xf] }
  0xd3   : > { %v4477_v2 = vor.u32 %v5343_v61, %v4474_v63  ;;  %v4360_v61 = vld [vmem:[#allocation7 + $0x4e0] sm:$0xf]  ;;  %v3940_v63 = vld [vmem:[#allocation7 + $0x198] sm:$0xf] }
  0xd4   : > { %2135 = vmatmul.bf16.vlgmr.msrb.gmra.mxu3 %v6007_v54 }
  0xd5   : > { %2179 = vmatpush.bf16.msra.mxu3 %v4357_v43  ;;  %2194 = vmatpush.bf16.msrb.mxu0 %v4477_v2  ;;  %v4217_v43 = vor.u32 %v5278_v39, %v4214_v40  ;;  %v5211_v2 = vld [vmem:[#allocation7 + $0x1a8] sm:$0xf0]  ;;  %v5189_v39 = vld [vmem:[#allocation7 + $0xfc] sm:$0xf]  ;;  %v3862_v40 = vld [vmem:[#allocation7 + $0x10c] sm:$0xf0] }
  0xd6   : > { %2168 = vmatpush.bf16.msra.mxu1 %v4157_v6  ;;  %v5236_v6 = vld [vmem:[#allocation7 + $0x270] sm:$0xf0]  ;;  %v3865_v42 = vor.u32 %v5189_v39, %v3862_v40 }
  0xd7   : > { %v4041_v7 = vor.u32 %v5236_v6, %v4040_v5  ;;  %v5266_v5 = vld [vmem:[#allocation7 + $0x360] sm:$0xf0]  ;;  %v4340_v6 = vld [vmem:[#allocation7 + $0x4b8] sm:$0xf] }
  0xd8   : > { %v4161_v11 = vor.u32 %v5266_v5, %v4160_v4  ;;  %v5179_v4 = vld [vmem:[#allocation7 + $0xac] sm:$0xf]  ;;  %v3822_v5 = vld [vmem:[#allocation7 + $0xbc] sm:$0xf0] }
  0xd9   : > { %2180 = vmatpush.bf16.msra.mxu3 %v4337_v51  ;;  %2195 = vmatpush.bf16.msrb.mxu0 %v4457_v16  ;;  %v3960_v51 = vld [vmem:[#allocation7 + $0x1c0] sm:$0xf]  ;;  %v4140_v16 = vld [vmem:[#allocation7 + $0x328] sm:$0xf] }
  0xda   : > { %2169 = vmatpush.bf16.msra.mxu1 %v4137_v17  ;;  %v4020_v17 = vld [vmem:[#allocation7 + $0x238] sm:$0xf] }
  0xdb   : > { %v4021_v19 = vor.u32 %v5231_v18, %v4020_v17  ;;  %v5261_v17 = vld [vmem:[#allocation7 + $0x338] sm:$0xf0]  ;;  %v4320_v18 = vld [vmem:[#allocation7 + $0x490] sm:$0xf] }
  0xdc   : > { %v4321_v24 = vor.u32 %v5306_v20, %v4320_v18  ;;  %v5286_v18 = vld [vmem:[#allocation7 + $0x400] sm:$0xf0] }
  0xdd   : > { %2181 = vmatpush.bf16.msra.mxu3 %v4317_v55  ;;  %2122 = vmatmul.bf16.vlgmr.msrb.gmra.mxu1 %v6001_v12  ;;  %v3961_v55 = vor.u32 %v5216_v52, %v3960_v51  ;;  %v5184_v52 = vld [vmem:[#allocation7 + $0xd4] sm:$0xf] }
  0xde   : > { %2170 = vmatpush.bf16.msra.mxu1 %v4117_v26  ;;  %v4000_v26 = vld [vmem:[#allocation7 + $0x210] sm:$0xf]  ;;  %2196 = vmatpush.bf16.msrb.mxu0 %v4437_v25  ;;  %v3901_v25 = vor.u32 %v5201_v22, %v3900_v21  ;;  %v5234_v21 = vld [vmem:[#allocation7 + $0x264] sm:$0xf]  ;;  %v4042_v22 = vld [vmem:[#allocation7 + $0x274] sm:$0xf0] }
  0xdf   : > { %v4001_v28 = vor.u32 %v5226_v27, %v4000_v26  ;;  %v782_v26 = vperm.slane %v5989_v14, 2  ;;  %v5194_v27 = vld [vmem:[#allocation7 + $0x124] sm:$0xf] }
  0xe1   : > { %2182 = vmatpush.bf16.msra.mxu3 %v4297_v62  ;;  %v5316_v62 = vld [vmem:[#allocation7 + $0x4f0] sm:$0xf0]  ;;  %v6012_v30 = vpack.c.bf16 %v782_v26, %v782_v26  ;;  %v4045_v26 = vor.u32 %v5234_v21, %v4042_v22  ;;  %v4502_v21 = vld [vmem:[#allocation7 + $0x60c] sm:$0xf0]  ;;  %v4072_v22 = vld [vmem:[#allocation7 + $0x2a8] sm:$0xf] }
  0xe2   : > { %2171 = vmatpush.bf16.msra.mxu1 %v4097_v36  ;;  %v5221_v36 = vld [vmem:[#allocation7 + $0x1f8] sm:$0xf0]  ;;  %2197 = vmatpush.bf16.msrb.mxu0 %v4417_v34  ;;  %v4361_v1 = vor.u32 %v5316_v62, %v4360_v61  ;;  %v4300_v34 = vld [vmem:[#allocation7 + $0x468] sm:$0xf]  ;;  %v5246_v61 = vld [vmem:[#allocation7 + $0x2c0] sm:$0xf0] }
  0xe3   : > { %v3981_v38 = vor.u32 %v5221_v36, %v3980_v35  ;;  %v5301_v36 = vld [vmem:[#allocation7 + $0x478] sm:$0xf0]  ;;  %v4260_v62 = vld [vmem:[#allocation7 + $0x418] sm:$0xf] }
  0xe4   : > { %v4301_v14 = vor.u32 %v5301_v36, %v4300_v34  ;;  %v5229_v34 = vld [vmem:[#allocation7 + $0x23c] sm:$0xf]  ;;  %v5274_v36 = vld [vmem:[#allocation7 + $0x3a4] sm:$0xf] }
  0xe5   : > { %2183 = vmatpush.bf16.msra.mxu3 %v4277_v13 }
  0xe6   : > { %2172 = vmatpush.bf16.msra.mxu1 %v4077_v58  ;;  %2198 = vmatpush.bf16.msrb.mxu0 %v4397_v45  ;;  %v4377_v58 = vor.u32 %v5318_v56, %v4374_v57  ;;  %v4280_v45 = vld [vmem:[#allocation7 + $0x440] sm:$0xf]  ;;  %v4192_v56 = vld [vmem:[#allocation7 + $0x398] sm:$0xf]  ;;  %v5275_v57 = vld [vmem:[#allocation7 + $0x3a8] sm:$0xf0] }
  0xe7   : > { %v4281_v51 = vor.u32 %v5296_v47, %v4280_v45  ;;  %v4002_v47 = vld [vmem:[#allocation7 + $0x224] sm:$0xf0] }
  0xe9   : > { %2184 = vmatpush.bf16.msra.mxu3 %v4257_v23  ;;  %v4141_v23 = vor.u32 %v5261_v17, %v4140_v16  ;;  %v4240_v16 = vld [vmem:[#allocation7 + $0x3f0] sm:$0xf] }
  0xea   : > { %2173 = vmatpush.bf16.msra.mxu1 %v4057_v3  ;;  %2199 = vmatpush.bf16.msrb.mxu0 %v4377_v58  ;;  %v3941_v3 = vor.u32 %v5211_v2, %v3940_v63  ;;  %v4241_v20 = vor.u32 %v5286_v18, %v4240_v16  ;;  %v4142_v16 = vld [vmem:[#allocation7 + $0x33c] sm:$0xf0] }
  0xed   : > { %2185 = vmatpush.bf16.msra.mxu3 %v4237_v32  ;;  %2200 = vmatmul.bf16.vlgmr.msrb.gmra.mxu0 %v6007_v54  ;;  %v4120_v32 = vld [vmem:[#allocation7 + $0x300] sm:$0xf] }
  0xee   : > { %2218 = vmatpush.bf16.msrb.mxu1 %v4041_v7  ;;  %2244 = vmatpush.bf16.msra.mxu0 %v4361_v1  ;;  %v5311_v7 = vld [vmem:[#allocation7 + $0x4c8] sm:$0xf0] }
  0xef   : > { %v4341_v13 = vor.u32 %v5311_v7, %v4340_v6  ;;  %2174 = vmatmul.bf16.vlgmr.msra.gmra.mxu1 %v6012_v30  ;;  %v4193_v6 = vor.u32 %v5275_v57, %v4192_v56  ;;  %v4172_v7 = vld [vmem:[#allocation7 + $0x370] sm:$0xf]  ;;  %v4112_v57 = vld [vmem:[#allocation7 + $0x2f8] sm:$0xf] }
  0xf1   : > { %2186 = vmatpush.bf16.msra.mxu3 %v4217_v43  ;;  %v4100_v43 = vld [vmem:[#allocation7 + $0x2d8] sm:$0xf] }
  0xf2   : > { %2219 = vmatpush.bf16.msrb.mxu1 %v4021_v19  ;;  %2245 = vmatpush.bf16.msra.mxu0 %v4341_v13  ;;  %v707_v19 = vadd.f32 %v706_v10, %v705_v53  ;;  %v3842_v53 = vld [vmem:[#allocation7 + $0xe4] sm:$0xf0]  ;;  %v4081_v10 = vor.u32 %v5246_v61, %v4080_v60  ;;  %v5219_v60 = vld [vmem:[#allocation7 + $0x1ec] sm:$0xf]  ;;  %v3982_v61 = vld [vmem:[#allocation7 + $0x1fc] sm:$0xf0] }
  0xf3   : > { %v3845_v59 = vor.u32 %v5184_v52, %v3842_v53  ;;  %v4060_v13 = vld [vmem:[#allocation7 + $0x288] sm:$0xf] }
  0xf4   : > { %v708_v35 = vrot.slane %v707_v19, 1  ;;  %2187 = vmatmul.bf16.vlgmr.msra.gmra.mxu3 %v6001_v12  ;;  %v3762_v52 = vld [vmem:[#allocation7 + $0x44] sm:$0xf0] }
  0xf5   : > { %2231 = vmatpush.bf16.msrb.mxu3 %v4201_v50  ;;  %v4101_v50 = vor.u32 %v5251_v44, %v4100_v43  ;;  %v4132_v43 = vld [vmem:[#allocation7 + $0x320] sm:$0xf]  ;;  %v5260_v44 = vld [vmem:[#allocation7 + $0x330] sm:$0xf0] }
  0xf6   : > { %2220 = vmatpush.bf16.msrb.mxu1 %v4001_v28  ;;  %v3882_v28 = vld [vmem:[#allocation7 + $0x134] sm:$0xf0]  ;;  %2246 = vmatpush.bf16.msra.mxu0 %v4321_v24  ;;  %v709_v46 = vadd.f32 %v708_v35, %v707_v19  ;;  %v4173_v24 = vor.u32 %v5270_v8, %v4172_v7  ;;  %v4022_v35 = vld [vmem:[#allocation7 + $0x24c] sm:$0xf0]  ;;  %v4133_v53 = vor.u32 %v5260_v44, %v4132_v43  ;;  %v5250_v7 = vld [vmem:[#allocation7 + $0x2e0] sm:$0xf0] }
  0xf7   : > { %v3885_v31 = vor.u32 %v5194_v27, %v3882_v28  ;;  %v3802_v27 = vld [vmem:[#allocation7 + $0x94] sm:$0xf0]  ;;  %v5265_v28 = vld [vmem:[#allocation7 + $0x358] sm:$0xf0]  ;;  %v4025_v39 = vor.u32 %v5229_v34, %v4022_v35  ;;  %v5344_v34 = vld [vmem:[#allocation7 + $0x5d4] sm:$0xf] }
  0xf8   : > { %v710_v63 = vmul.f32 0.0625, %v709_v46  ;;  %v5224_v46 = vld [vmem:[#allocation7 + $0x214] sm:$0xf]  ;;  %v4482_v35 = vld [vmem:[#allocation7 + $0x5e4] sm:$0xf0] }
  0xf9   : > { %2232 = vmatpush.bf16.msrb.mxu3 %v4181_v0  ;;  %v5291_v0 = vld [vmem:[#allocation7 + $0x428] sm:$0xf0]  ;;  %v4102_v43 = vld [vmem:[#allocation7 + $0x2ec] sm:$0xf0] }
  0xfa   : > { %2221 = vmatpush.bf16.msrb.mxu1 %v3981_v38  ;;  %v4121_v38 = vor.u32 %v5256_v33, %v4120_v32  ;;  %2247 = vmatpush.bf16.msra.mxu0 %v4301_v14  ;;  %v711_v17 = vpack.c.bf16 %v710_v63, %v710_v63  ;;  %v5281_v32 = vld [vmem:[#allocation7 + $0x3d8] sm:$0xf0]  ;;  %v4162_v63 = vld [vmem:[#allocation7 + $0x364] sm:$0xf0] }
  0xfd   : > { %2233 = vmatpush.bf16.msrb.mxu3 %v4161_v11  ;;  %v3825_v11 = vor.u32 %v5179_v4, %v3822_v5  ;;  %v5354_v4 = vld [vmem:[#allocation7 + $0x624] sm:$0xf]  ;;  %v4522_v5 = vld [vmem:[#allocation7 + $0x634] sm:$0xf0] }
  0xfe   : > { %2222 = vmatpush.bf16.msrb.mxu1 %v3961_v55  ;;  %2248 = vmatpush.bf16.msra.mxu0 %v4281_v51  ;;  %v5164_v51 = vld [vmem:[#allocation7 + $0x34] sm:$0xf] }
 0x101   : > { %2234 = vmatpush.bf16.msrb.mxu3 %v4141_v23  ;;  %v5174_v23 = vld [vmem:[#allocation7 + $0x84] sm:$0xf] }
 0x102   : > { %2223 = vmatpush.bf16.msrb.mxu1 %v3941_v3  ;;  %v4261_v3 = vor.u32 %v5291_v0, %v4260_v62  ;;  %v5264_v62 = vld [vmem:[#allocation7 + $0x354] sm:$0xf]  ;;  %v5159_v0 = vld [vmem:[#allocation7 + $0xc] sm:$0xf] }
 0x104   : > { %2249 = vmatpush.bf16.msra.mxu0 %v4261_v3  ;;  %v4165_v3 = vor.u32 %v5264_v62, %v4162_v63  ;;  %v5197_v62 = vld [vmem:[#allocation7 + $0x138] sm:$0xf0]  ;;  %v5334_v63 = vld [vmem:[#allocation7 + $0x584] sm:$0xf] }
 0x105   : > { %2235 = vmatpush.bf16.msrb.mxu3 %v4121_v38  ;;  %v5169_v38 = vld [vmem:[#allocation7 + $0x5c] sm:$0xf] }
 0x106   : > { %2224 = vmatpush.bf16.msrb.mxu1 %v3921_v15  ;;  %v5241_v15 = vld [vmem:[#allocation7 + $0x298] sm:$0xf0] }
 0x107   : > { %v4061_v19 = vor.u32 %v5241_v15, %v4060_v13  ;;  %v3962_v13 = vld [vmem:[#allocation7 + $0x1d4] sm:$0xf0]  ;;  %v5259_v15 = vld [vmem:[#allocation7 + $0x32c] sm:$0xf] }
 0x108   : > { %2250 = vmatpush.bf16.msra.mxu0 %v4241_v20  ;;  %v5349_v20 = vld [vmem:[#allocation7 + $0x5fc] sm:$0xf] }
 0x109   : > { %2236 = vmatpush.bf16.msrb.mxu3 %v4101_v50  ;;  %v4182_v50 = vld [vmem:[#allocation7 + $0x38c] sm:$0xf0] }
 0x10a   : > { %2225 = vmatpush.bf16.msrb.mxu1 %v3901_v25  ;;  %v4152_v25 = vld [vmem:[#allocation7 + $0x348] sm:$0xf] }
 0x10b   : > { %v4153_v14 = vor.u32 %v5265_v28, %v4152_v25  ;;  %v5209_v25 = vld [vmem:[#allocation7 + $0x19c] sm:$0xf]  ;;  %v4122_v28 = vld [vmem:[#allocation7 + $0x314] sm:$0xf0] }
 0x10d   : > { %2237 = vmatpush.bf16.msrb.mxu3 %v4081_v10  ;;  %2226 = vmatmul.bf16.vlgmr.msrb.gmra.mxu1 %v5995_v49  ;;  %v3985_v10 = vor.u32 %v5219_v60, %v3982_v61  ;;  %v3888_v61 = vld [vmem:[#allocation7 + $0x128] sm:$0xf] }
 0x10e   : > { %2270 = vmatpush.bf16.msra.mxu1 %v3885_v31  ;;  %v4220_v31 = vld [vmem:[#allocation7 + $0x3c8] sm:$0xf] }
 0x10f   : > { %v4221_v33 = vor.u32 %v5281_v32, %v4220_v31  ;;  %v4052_v31 = vld [vmem:[#allocation7 + $0x280] sm:$0xf] }
 0x111   : > { %2238 = vmatpush.bf16.msrb.mxu3 %v4061_v19  ;;  %2251 = vmatpush.bf16.msra.mxu0 %v4221_v33  ;;  %v4145_v19 = vor.u32 %v5259_v15, %v4142_v16  ;;  %v5329_v15 = vld [vmem:[#allocation7 + $0x55c] sm:$0xf] }
 0x112   : > { %2271 = vmatpush.bf16.msra.mxu1 %v3865_v42  ;;  %v3782_v42 = vld [vmem:[#allocation7 + $0x6c] sm:$0xf0] }
 0x113   : > { %v3785_v45 = vor.u32 %v5169_v38, %v3782_v42  ;;  %v4034_v38 = vld [vmem:[#allocation7 + $0x26c] sm:$0xf0]  ;;  %v5249_v42 = vld [vmem:[#allocation7 + $0x2dc] sm:$0xf] }
 0x114   : > { %2239 = vmatmul.bf16.vlgmr.msrb.gmra.mxu3 %v6012_v30  ;;  %2252 = vmatmul.bf16.vlgmr.msra.gmra.mxu0 %v6001_v12 }
 0x115   : > { %2283 = vmatpush.bf16.msra.mxu3 %v4045_v26  ;;  %v3942_v26 = vld [vmem:[#allocation7 + $0x1ac] sm:$0xf0] }
 0x116   : > { %2272 = vmatpush.bf16.msra.mxu1 %v3845_v59  ;;  %v3765_v59 = vor.u32 %v5164_v51, %v3762_v52  ;;  %v3945_v32 = vor.u32 %v5209_v25, %v3942_v26  ;;  %v5228_v51 = vld [vmem:[#allocation7 + $0x234] sm:$0xf]  ;;  %v4014_v52 = vld [vmem:[#allocation7 + $0x244] sm:$0xf0]  ;;  %v4028_v25 = vld [vmem:[#allocation7 + $0x240] sm:$0xf] }
 0x117   : > { %v5232_v26 = vld [vmem:[#allocation7 + $0x250] sm:$0xf0] }
 0x119   : > { %2284 = vmatpush.bf16.msra.mxu3 %v4025_v39  ;;  %v5204_v39 = vld [vmem:[#allocation7 + $0x174] sm:$0xf] }
 0x11a   : > { %2273 = vmatpush.bf16.msra.mxu1 %v3825_v11  ;;  %v5214_v11 = vld [vmem:[#allocation7 + $0x1c4] sm:$0xf] }
 0x11b   : > { %v3965_v18 = vor.u32 %v5214_v11, %v3962_v13  ;;  %v4048_v11 = vld [vmem:[#allocation7 + $0x268] sm:$0xf]  ;;  %v5237_v13 = vld [vmem:[#allocation7 + $0x278] sm:$0xf0] }
 0x14a   : > { %v694_v29 = vpop.f32.mrf.mxu1 }
 0x14b   : > { %v695_v48 = vadd.f32 %v5549_v37, %v694_v29  ;;  %v3805_v29 = vor.u32 %v5174_v23, %v3802_v27  ;;  %v5245_v23 = vld [vmem:[#allocation7 + $0x2b8] sm:$0xf0]  ;;  %v5254_v27 = vld [vmem:[#allocation7 + $0x304] sm:$0xf] }
 0x14c   : > { %v4125_v33 = vor.u32 %v5254_v27, %v4122_v28  ;;  %v5324_v27 = vld [vmem:[#allocation7 + $0x534] sm:$0xf]  ;;  %v4402_v28 = vld [vmem:[#allocation7 + $0x544] sm:$0xf0] }
 0x14d   : > { %v699_v1 = vmax.f32 %v695_v48, 0.0  ;;  %2274 = vmatpush.bf16.msra.mxu1 %v3805_v29  ;;  %v5269_v48 = vld [vmem:[#allocation7 + $0x37c] sm:$0xf]  ;;  %v4073_v29 = vor.u32 %v5245_v23, %v4072_v22  ;;  %v3848_v23 = vld [vmem:[#allocation7 + $0xd8] sm:$0xf] }
 0x14e   : > { %v4185_v56 = vor.u32 %v5269_v48, %v4182_v50  ;;  %v4462_v48 = vld [vmem:[#allocation7 + $0x5bc] sm:$0xf0] }
 0x151   : > { %2275 = vmatpush.bf16.msra.mxu1 %v3785_v45 }
 0x152   : > { %v696_v55 = vpop.f32.mrf.mxu1 }
 0x153   : > { %v697_v58 = vadd.f32 %v5549_v37, %v696_v55  ;;  %v4202_v37 = vld [vmem:[#allocation7 + $0x3b4] sm:$0xf0]  ;;  %v4005_v55 = vor.u32 %v5224_v46, %v4002_v47  ;;  %v4105_v46 = vor.u32 %v5249_v42, %v4102_v43  ;;  %v5339_v47 = vld [vmem:[#allocation7 + $0x5ac] sm:$0xf] }
 0x154   : > { %v4205_v40 = vor.u32 %v5274_v36, %v4202_v37  ;;  %v5240_v36 = vld [vmem:[#allocation7 + $0x290] sm:$0xf0]  ;;  %v5233_v37 = vld [vmem:[#allocation7 + $0x25c] sm:$0xf] }
 0x155   : > { %v700_v2 = vmax.f32 %v697_v58, 0.0  ;;  %v5255_v58 = vld [vmem:[#allocation7 + $0x308] sm:$0xf0]  ;;  %2285 = vmatpush.bf16.msra.mxu3 %v4005_v55  ;;  %2276 = vmatpush.bf16.msra.mxu1 %v3765_v59  ;;  %v4053_v44 = vor.u32 %v5240_v36, %v4052_v31  ;;  %v4037_v50 = vor.u32 %v5233_v37, %v4034_v38  ;;  %v3828_v36 = vld [vmem:[#allocation7 + $0xb0] sm:$0xf] }
 0x156   : > { %2296 = vmatpush.bf16.msrb.mxu0 %v4205_v40  ;;  %v3922_v40 = vld [vmem:[#allocation7 + $0x184] sm:$0xf0]  ;;  %v5199_v55 = vld [vmem:[#allocation7 + $0x14c] sm:$0xf]  ;;  %v5182_v37 = vld [vmem:[#allocation7 + $0xc0] sm:$0xf0] }
 0x157   : > { %v712_v9 = vpack.c.bf16 %v700_v2, %v699_v1  ;;  %v3742_v1 = vld [vmem:[#allocation7 + $0x1c] sm:$0xf0]  ;;  %v4113_v2 = vor.u32 %v5255_v58, %v4112_v57  ;;  %v3925_v45 = vor.u32 %v5204_v39, %v3922_v40  ;;  %v5244_v57 = vld [vmem:[#allocation7 + $0x2b4] sm:$0xf]  ;;  %v4082_v58 = vld [vmem:[#allocation7 + $0x2c4] sm:$0xf0]  ;;  %v3829_v43 = vor.u32 %v5182_v37, %v3828_v36 }
 0x158   : > { %v3745_v8 = vor.u32 %v5159_v0, %v3742_v1  ;;  %v4085_v60 = vor.u32 %v5244_v57, %v4082_v58  ;;  %v4017_v0 = vor.u32 %v5228_v51, %v4014_v52  ;;  %v5223_v1 = vld [vmem:[#allocation7 + $0x20c] sm:$0xf]  ;;  %v4008_v38 = vld [vmem:[#allocation7 + $0x218] sm:$0xf]  ;;  %v4382_v40 = vld [vmem:[#allocation7 + $0x51c] sm:$0xf0] }
 0x159   : > { %723 = vmatpush.bf16.msra.mxu2 %v712_v9  ;;  %v4525_v9 = vor.u32 %v5354_v4, %v4522_v5  ;;  %2286 = vmatpush.bf16.msra.mxu3 %v3985_v10  ;;  %v4442_v10 = vld [vmem:[#allocation7 + $0x594] sm:$0xf0]  ;;  %v5239_v5 = vld [vmem:[#allocation7 + $0x28c] sm:$0xf]  ;;  %v3808_v52 = vld [vmem:[#allocation7 + $0x88] sm:$0xf] }
 0x15a   : > { %2297 = vmatpush.bf16.msrb.mxu0 %v4185_v56  ;;  %2277 = vmatpush.bf16.msra.mxu1 %v3745_v8  ;;  %v3902_v56 = vld [vmem:[#allocation7 + $0x15c] sm:$0xf0]  ;;  %v4445_v4 = vor.u32 %v5334_v63, %v4442_v10  ;;  %v5319_v39 = vld [vmem:[#allocation7 + $0x50c] sm:$0xf]  ;;  %v3968_v10 = vld [vmem:[#allocation7 + $0x1c8] sm:$0xf] }
 0x15b   : > { %v3905_v59 = vor.u32 %v5199_v55, %v3902_v56  ;;  %v3868_v8 = vld [vmem:[#allocation7 + $0x100] sm:$0xf]  ;;  %v3988_v55 = vld [vmem:[#allocation7 + $0x1f0] sm:$0xf]  ;;  %v5222_v56 = vld [vmem:[#allocation7 + $0x200] sm:$0xf0] }
 0x15c   : > { %3729 = vmatmul.msk.bf16.vlgmr.msra.gmra.mxu2 %vm598_vm0, %v711_v17  ;;  %v3914_v63 = vld [vmem:[#allocation7 + $0x17c] sm:$0xf0]  ;;  %v4528_v37 = vld [vmem:[#allocation7 + $0x628] sm:$0xf] }
 0x15d   : > { %2101 = vmatpush.bf16.msrb.mxu2 %v4193_v6  ;;  %v4092_v6 = vld [vmem:[#allocation7 + $0x2d0] sm:$0xf]  ;;  %2287 = vmatpush.bf16.msra.mxu3 %v3965_v18  ;;  %v4049_v18 = vor.u32 %v5237_v13, %v4048_v11  ;;  %v3894_v11 = vld [vmem:[#allocation7 + $0x154] sm:$0xf0]  ;;  %v3880_v13 = vld [vmem:[#allocation7 + $0x120] sm:$0xf] }
 0x15e   : > { %2298 = vmatpush.bf16.msrb.mxu0 %v4165_v3  ;;  %v4093_v17 = vor.u32 %v5250_v7, %v4092_v6  ;;  %2322 = vmatpush.bf16.msrb.mxu1 %v4525_v9  ;;  %v3994_v3 = vld [vmem:[#allocation7 + $0x21c] sm:$0xf0]  ;;  %v5192_v9 = vld [vmem:[#allocation7 + $0x110] sm:$0xf0] }
 0x15f   : > { %2278 = vmatmul.bf16.vlgmr.msra.gmra.mxu1 %v5992_v41  ;;  %v4062_v6 = vld [vmem:[#allocation7 + $0x29c] sm:$0xf0]  ;;  %v3997_v16 = vor.u32 %v5223_v1, %v3994_v3  ;;  %v5217_v3 = vld [vmem:[#allocation7 + $0x1d8] sm:$0xf0] }
 0x160   : > { %v4065_v7 = vor.u32 %v5239_v5, %v4062_v6  ;;  %v3788_v1 = vld [vmem:[#allocation7 + $0x60] sm:$0xf]  ;;  %v5198_v5 = vld [vmem:[#allocation7 + $0x144] sm:$0xf] }
 0x161   : > { %2102 = vmatpush.bf16.msrb.mxu2 %v4173_v24  ;;  %v4505_v24 = vor.u32 %v5349_v20, %v4502_v21  ;;  %2288 = vmatpush.bf16.msra.mxu3 %v3945_v32  ;;  %v5218_v20 = vld [vmem:[#allocation7 + $0x1e4] sm:$0xf]  ;;  %v3974_v21 = vld [vmem:[#allocation7 + $0x1f4] sm:$0xf0]  ;;  %v4029_v32 = vor.u32 %v5232_v26, %v4028_v25 }
 0x162   : > { %2299 = vmatpush.bf16.msrb.mxu0 %v4145_v19  ;;  %v4422_v19 = vld [vmem:[#allocation7 + $0x56c] sm:$0xf0]  ;;  %v5302_v25 = vld [vmem:[#allocation7 + $0x480] sm:$0xf0] }
 0x163   : > { %2323 = vmatpush.bf16.msrb.mxu1 %v4505_v24  ;;  %v4425_v22 = vor.u32 %v5329_v15, %v4422_v19  ;;  %v5187_v24 = vld [vmem:[#allocation7 + $0xe8] sm:$0xf0]  ;;  %v5196_v15 = vld [vmem:[#allocation7 + $0x130] sm:$0xf0]  ;;  %v3948_v19 = vld [vmem:[#allocation7 + $0x1a0] sm:$0xf] }
 0x164   : > { %v3849_v31 = vor.u32 %v5187_v24, %v3848_v23  ;;  %v4308_v24 = vld [vmem:[#allocation7 + $0x470] sm:$0xf]  ;;  %v3881_v26 = vor.u32 %v5196_v15, %v3880_v13  ;;  %v5342_v13 = vld [vmem:[#allocation7 + $0x5c0] sm:$0xf0]  ;;  %v4632_v15 = vld [vmem:[#allocation5 + $0xc8] sm:$0xf] }
 0x165   : > { %2103 = vmatpush.bf16.msrb.mxu2 %v4153_v14  ;;  %v4485_v14 = vor.u32 %v5344_v34, %v4482_v35  ;;  %2289 = vmatpush.bf16.msra.mxu3 %v3925_v45  ;;  %v3954_v34 = vld [vmem:[#allocation7 + $0x1cc] sm:$0xf0]  ;;  %v4405_v35 = vor.u32 %v5324_v27, %v4402_v28  ;;  %v4368_v45 = vld [vmem:[#allocation7 + $0x4e8] sm:$0xf]  ;;  %v3860_v27 = vld [vmem:[#allocation7 + $0xf8] sm:$0xf] }
 0x166   : > { %2300 = vmatpush.bf16.msrb.mxu0 %v4125_v33  ;;  %v5213_v33 = vld [vmem:[#allocation7 + $0x1bc] sm:$0xf]  ;;  %v5191_v28 = vld [vmem:[#allocation7 + $0x108] sm:$0xf0] }
 0x167   : > { %2324 = vmatpush.bf16.msrb.mxu1 %v4485_v14  ;;  %v5227_v14 = vld [vmem:[#allocation7 + $0x228] sm:$0xf0]  ;;  %v3957_v42 = vor.u32 %v5213_v33, %v3954_v34  ;;  %v3928_v33 = vld [vmem:[#allocation7 + $0x178] sm:$0xf] }
 0x168   : > { %v5207_v34 = vld [vmem:[#allocation7 + $0x188] sm:$0xf0] }
 0x169   : > { %2104 = vmatpush.bf16.msrb.mxu2 %v4133_v53  ;;  %v4465_v53 = vor.u32 %v5339_v47, %v4462_v48  ;;  %2290 = vmatpush.bf16.msra.mxu3 %v3905_v59  ;;  %v5208_v47 = vld [vmem:[#allocation7 + $0x194] sm:$0xf]  ;;  %v3934_v48 = vld [vmem:[#allocation7 + $0x1a4] sm:$0xf0]  ;;  %v3989_v59 = vor.u32 %v5222_v56, %v3988_v55  ;;  %v3929_v36 = vor.u32 %v5207_v34, %v3928_v33  ;;  %v4268_v55 = vld [vmem:[#allocation7 + $0x420] sm:$0xf] }
 0x16a   : > { %2301 = vmatpush.bf16.msrb.mxu0 %v4105_v46  ;;  %v5317_v46 = vld [vmem:[#allocation7 + $0x4f8] sm:$0xf0]  ;;  %v3937_v57 = vor.u32 %v5208_v47, %v3934_v48  ;;  %v5202_v47 = vld [vmem:[#allocation7 + $0x160] sm:$0xf0] }
 0x16b   : > { %2325 = vmatpush.bf16.msrb.mxu1 %v4465_v53  ;;  %v4369_v51 = vor.u32 %v5317_v46, %v4368_v45  ;;  %v5177_v53 = vld [vmem:[#allocation7 + $0x98] sm:$0xf0]  ;;  %v3908_v46 = vld [vmem:[#allocation7 + $0x150] sm:$0xf] }
 0x16c   : > { %2291 = vmatmul.bf16.vlgmr.msra.gmra.mxu3 %v5995_v49  ;;  %v3809_v58 = vor.u32 %v5177_v53, %v3808_v52  ;;  %v3909_v48 = vor.u32 %v5202_v47, %v3908_v46  ;;  %v4672_v52 = vld [vmem:[#allocation5 + $0x118] sm:$0xf]  ;;  %v5155_v53 = vld [vmem:[#allocation5 + $0x128] sm:$0xf0] }
 0x16d   : > { %2105 = vmatpush.bf16.msrb.mxu2 %v4113_v2  ;;  %v3889_v2 = vor.u32 %v5197_v62, %v3888_v61  ;;  %v5312_v61 = vld [vmem:[#allocation7 + $0x4d0] sm:$0xf0]  ;;  %v5203_v62 = vld [vmem:[#allocation7 + $0x16c] sm:$0xf] }
 0x16e   : > { %2302 = vmatpush.bf16.msrb.mxu0 %v4085_v60  ;;  %v4348_v60 = vld [vmem:[#allocation7 + $0x4c0] sm:$0xf] }
 0x16f   : > { %2335 = vmatpush.bf16.msrb.mxu3 %v3889_v2  ;;  %2326 = vmatpush.bf16.msrb.mxu1 %v4445_v4  ;;  %v5172_v2 = vld [vmem:[#allocation7 + $0x70] sm:$0xf0]  ;;  %v3917_v4 = vor.u32 %v5203_v62, %v3914_v63  ;;  %v4488_v63 = vld [vmem:[#allocation7 + $0x5d8] sm:$0xf] }
 0x170   : > { %v3789_v6 = vor.u32 %v5172_v2, %v3788_v1  ;;  %v4652_v1 = vld [vmem:[#allocation5 + $0xf0] sm:$0xf]  ;;  %v5150_v2 = vld [vmem:[#allocation5 + $0x100] sm:$0xf0] }
 0x171   : > { %2106 = vmatpush.bf16.msrb.mxu2 %v4093_v17  ;;  %v3869_v17 = vor.u32 %v5192_v9, %v3868_v8  ;;  %v4328_v8 = vld [vmem:[#allocation7 + $0x498] sm:$0xf]  ;;  %v5307_v9 = vld [vmem:[#allocation7 + $0x4a8] sm:$0xf0] }
 0x172   : > { %2303 = vmatpush.bf16.msrb.mxu0 %v4065_v7  ;;  %v3969_v7 = vor.u32 %v5217_v3, %v3968_v10  ;;  %v4248_v10 = vld [vmem:[#allocation7 + $0x3f8] sm:$0xf]  ;;  %v5287_v3 = vld [vmem:[#allocation7 + $0x408] sm:$0xf0] }
 0x173   : > { %2336 = vmatpush.bf16.msrb.mxu3 %v3869_v17  ;;  %2327 = vmatpush.bf16.msrb.mxu1 %v4425_v22  ;;  %v3768_v17 = vld [vmem:[#allocation7 + $0x38] sm:$0xf] }
 0x175   : > { %2107 = vmatpush.bf16.msrb.mxu2 %v4073_v29  ;;  %v3977_v29 = vor.u32 %v5218_v20, %v3974_v21  ;;  %2304 = vmatmul.bf16.vlgmr.msrb.gmra.mxu0 %v6012_v30  ;;  %v5212_v20 = vld [vmem:[#allocation7 + $0x1b0] sm:$0xf0]  ;;  %v3897_v21 = vor.u32 %v5198_v5, %v3894_v11  ;;  %v4468_v11 = vld [vmem:[#allocation7 + $0x5b0] sm:$0xf] }
 0x176   : > { %2348 = vmatpush.bf16.msra.mxu0 %v4049_v18  ;;  %v5167_v18 = vld [vmem:[#allocation7 + $0x48] sm:$0xf0]  ;;  %v3949_v23 = vor.u32 %v5212_v20, %v3948_v19  ;;  %v4469_v20 = vor.u32 %v5342_v13, %v4468_v11  ;;  %v5154_v11 = vld [vmem:[#allocation5 + $0x124] sm:$0xf]  ;;  %v4682_v13 = vld [vmem:[#allocation5 + $0x134] sm:$0xf0] }
 0x177   : > { %2337 = vmatpush.bf16.msrb.mxu3 %v3849_v31  ;;  %2328 = vmatpush.bf16.msrb.mxu1 %v4405_v35  ;;  %v3769_v22 = vor.u32 %v5167_v18, %v3768_v17  ;;  %v3748_v31 = vld [vmem:[#allocation7 + $0x10] sm:$0xf]  ;;  %v5282_v18 = vld [vmem:[#allocation7 + $0x3e0] sm:$0xf0] }
 0x178   : > { %v4228_v17 = vld [vmem:[#allocation7 + $0x3d0] sm:$0xf] }
 0x179   : > { %2108 = vmatpush.bf16.msrb.mxu2 %v4053_v44  ;;  %v4009_v44 = vor.u32 %v5227_v14, %v4008_v38  ;;  %v5357_v38 = vld [vmem:[#allocation7 + $0x638] sm:$0xf0]  ;;  %v4288_v14 = vld [vmem:[#allocation7 + $0x448] sm:$0xf] }
 0x17a   : > { %2349 = vmatpush.bf16.msra.mxu0 %v4029_v32  ;;  %v5162_v32 = vld [vmem:[#allocation7 + $0x20] sm:$0xf0] }
 0x17b   : > { %2338 = vmatpush.bf16.msrb.mxu3 %v3829_v43  ;;  %v3749_v35 = vor.u32 %v5162_v32, %v3748_v31  ;;  %v5297_v43 = vld [vmem:[#allocation7 + $0x458] sm:$0xf0]  ;;  %v5140_v31 = vld [vmem:[#allocation5 + $0xb0] sm:$0xf0] }
 0x17c   : > { %2109 = vmatmul.bf16.vlgmr.msrb.gmra.mxu2 %v6012_v30  ;;  %v4289_v45 = vor.u32 %v5297_v43, %v4288_v14  ;;  %v5135_v43 = vld [vmem:[#allocation5 + $0x88] sm:$0xf0] }
 0x17d   : > { %2153 = vmatpush.bf16.msra.mxu2 %v4037_v50  ;;  %v4385_v50 = vor.u32 %v5319_v39, %v4382_v40  ;;  %v3861_v39 = vor.u32 %v5191_v28, %v3860_v27  ;;  %v3840_v40 = vld [vmem:[#allocation7 + $0xd0] sm:$0xf]  ;;  %v4448_v27 = vld [vmem:[#allocation7 + $0x588] sm:$0xf]  ;;  %v5337_v28 = vld [vmem:[#allocation7 + $0x598] sm:$0xf0] }
 0x17e   : > { %2350 = vmatpush.bf16.msra.mxu0 %v4009_v44  ;;  %v5186_v44 = vld [vmem:[#allocation7 + $0xe0] sm:$0xf0]  ;;  %v4449_v33 = vor.u32 %v5337_v28, %v4448_v27  ;;  %v5157_v27 = vld [vmem:[#allocation5 + $0x138] sm:$0xf0]  ;;  %v4580_v28 = vld [vmem:[#allocation5 + $0x58] sm:$0xf] }
 0x17f   : > { %2329 = vmatpush.bf16.msrb.mxu1 %v4385_v50  ;;  %2339 = vmatpush.bf16.msrb.mxu3 %v3809_v58  ;;  %v4508_v50 = vld [vmem:[#allocation7 + $0x600] sm:$0xf]  ;;  %v3841_v56 = vor.u32 %v5186_v44, %v3840_v40  ;;  %v4673_v58 = vor.u32 %v5155_v53, %v4672_v52  ;;  %v5332_v40 = vld [vmem:[#allocation7 + $0x570] sm:$0xf0] }
 0x180   : > { %v4520_v52 = vld [vmem:[#allocation7 + $0x620] sm:$0xf]  ;;  %v5356_v53 = vld [vmem:[#allocation7 + $0x630] sm:$0xf0] }
 0x181   : > { %2154 = vmatpush.bf16.msra.mxu2 %v4017_v0  ;;  %v4349_v0 = vor.u32 %v5312_v61, %v4348_v60  ;;  %v3820_v60 = vld [vmem:[#allocation7 + $0xa8] sm:$0xf]  ;;  %v5181_v61 = vld [vmem:[#allocation7 + $0xb8] sm:$0xf0] }
 0x182   : > { %2351 = vmatpush.bf16.msra.mxu0 %v3989_v59  ;;  %2330 = vmatmul.bf16.vlgmr.msrb.gmra.mxu1 %v6007_v54  ;;  %v5292_v59 = vld [vmem:[#allocation7 + $0x430] sm:$0xf0] }
 0x183   : > { %2374 = vmatpush.bf16.msra.mxu1 %v4369_v51  ;;  %2340 = vmatpush.bf16.msrb.mxu3 %v3789_v6  ;;  %v5352_v51 = vld [vmem:[#allocation7 + $0x610] sm:$0xf0]  ;;  %v4269_v62 = vor.u32 %v5292_v59, %v4268_v55  ;;  %v4653_v6 = vor.u32 %v5150_v2, %v4652_v1  ;;  %v5130_v59 = vld [vmem:[#allocation5 + $0x60] sm:$0xf0]  ;;  %v4521_v1 = vor.u32 %v5356_v53, %v4520_v52  ;;  %v4500_v2 = vld [vmem:[#allocation7 + $0x5f8] sm:$0xf] }
 0x184   : > { %v5147_v52 = vld [vmem:[#allocation5 + $0xe8] sm:$0xf0]  ;;  %v4540_v53 = vld [vmem:[#allocation5 + $0x8] sm:$0xf] }
 0x185   : > { %2155 = vmatpush.bf16.msra.mxu2 %v3997_v16  ;;  %v4329_v16 = vor.u32 %v5307_v9, %v4328_v8  ;;  %v5176_v8 = vld [vmem:[#allocation7 + $0x90] sm:$0xf0]  ;;  %v4249_v9 = vor.u32 %v5287_v3, %v4248_v10  ;;  %v5351_v10 = vld [vmem:[#allocation7 + $0x608] sm:$0xf0] }
 0x186   : > { %2352 = vmatpush.bf16.msra.mxu0 %v3969_v7  ;;  %v3800_v7 = vld [vmem:[#allocation7 + $0x80] sm:$0xf] }
 0x187   : > { %2375 = vmatpush.bf16.msra.mxu1 %v4349_v0  ;;  %2341 = vmatpush.bf16.msrb.mxu3 %v3769_v22  ;;  %v5347_v0 = vld [vmem:[#allocation7 + $0x5e8] sm:$0xf0]  ;;  %v3801_v19 = vor.u32 %v5176_v8, %v3800_v7  ;;  %v4680_v22 = vld [vmem:[#allocation5 + $0x120] sm:$0xf]  ;;  %v5125_v7 = vld [vmem:[#allocation5 + $0x38] sm:$0xf0] }
 0x188   : > { %v4489_v5 = vor.u32 %v5347_v0, %v4488_v63  ;;  %v4620_v63 = vld [vmem:[#allocation5 + $0xa8] sm:$0xf]  ;;  %v5141_v0 = vld [vmem:[#allocation5 + $0xb8] sm:$0xf0] }
 0x189   : > { %2156 = vmatpush.bf16.msra.mxu2 %v3977_v29  ;;  %v4309_v29 = vor.u32 %v5302_v25, %v4308_v24  ;;  %v3780_v24 = vld [vmem:[#allocation7 + $0x58] sm:$0xf]  ;;  %v5171_v25 = vld [vmem:[#allocation7 + $0x68] sm:$0xf0]  ;;  %v4621_v3 = vor.u32 %v5141_v0, %v4620_v63  ;;  %v4628_v0 = vld [vmem:[#allocation5 + $0xb0] sm:$0xf] }
 0x18a   : > { %2353 = vmatpush.bf16.msra.mxu0 %v3949_v23  ;;  %v5156_v23 = vld [vmem:[#allocation5 + $0x130] sm:$0xf0]  ;;  %v3781_v32 = vor.u32 %v5171_v25, %v3780_v24  ;;  %v5149_v25 = vld [vmem:[#allocation5 + $0xfc] sm:$0xf]  ;;  %v4602_v63 = vld [vmem:[#allocation5 + $0x94] sm:$0xf0] }
 0x18b   : > { %2376 = vmatpush.bf16.msra.mxu1 %v4329_v16  ;;  %2342 = vmatpush.bf16.msrb.mxu3 %v3749_v35  ;;  %v5145_v16 = vld [vmem:[#allocation5 + $0xd8] sm:$0xf0]  ;;  %v4660_v35 = vld [vmem:[#allocation5 + $0xf8] sm:$0xf] }
 0x18d   : > { %2157 = vmatpush.bf16.msra.mxu2 %v3957_v42  ;;  %v4529_v42 = vor.u32 %v5357_v38, %v4528_v37  ;;  %v3760_v37 = vld [vmem:[#allocation7 + $0x30] sm:$0xf]  ;;  %v5166_v38 = vld [vmem:[#allocation7 + $0x40] sm:$0xf0] }
 0x18e   : > { %2354 = vmatpush.bf16.msra.mxu0 %v3929_v36  ;;  %2343 = vmatmul.bf16.vlgmr.msrb.gmra.mxu3 %v5992_v41  ;;  %v5151_v36 = vld [vmem:[#allocation5 + $0x108] sm:$0xf0]  ;;  %v3761_v44 = vor.u32 %v5166_v38, %v3760_v37  ;;  %v4642_v37 = vld [vmem:[#allocation5 + $0xe4] sm:$0xf0]  ;;  %v4668_v38 = vld [vmem:[#allocation5 + $0x100] sm:$0xf] }
 0x18f   : > { %2377 = vmatpush.bf16.msra.mxu1 %v4309_v29  ;;  %2387 = vmatpush.bf16.msra.mxu3 %v4529_v42  ;;  %v4612_v29 = vld [vmem:[#allocation5 + $0xa0] sm:$0xf]  ;;  %v4661_v14 = vor.u32 %v5151_v36, %v4660_v35  ;;  %v4592_v42 = vld [vmem:[#allocation5 + $0x78] sm:$0xf]  ;;  %v5341_v35 = vld [vmem:[#allocation7 + $0x5b8] sm:$0xf0] }
 0x190   : > { %v4613_v34 = vor.u32 %v5140_v31, %v4612_v29  ;;  %v4593_v47 = vor.u32 %v5135_v43, %v4592_v42 }
 0x191   : > { %2158 = vmatpush.bf16.msra.mxu2 %v3937_v57  ;;  %v4509_v57 = vor.u32 %v5352_v51, %v4508_v50  ;;  %v5146_v50 = vld [vmem:[#allocation5 + $0xe0] sm:$0xf0]  ;;  %v5161_v51 = vld [vmem:[#allocation7 + $0x18] sm:$0xf0] }
 0x192   : > { %2355 = vmatpush.bf16.msra.mxu0 %v3909_v48  ;;  %v4640_v48 = vld [vmem:[#allocation5 + $0xd0] sm:$0xf] }
 0x193   : > { %2378 = vmatpush.bf16.msra.mxu1 %v4289_v45  ;;  %2388 = vmatpush.bf16.msra.mxu3 %v4509_v57  ;;  %v3740_v45 = vld [vmem:[#allocation7 + $0x8] sm:$0xf]  ;;  %v4641_v55 = vor.u32 %v5146_v50, %v4640_v48  ;;  %v5327_v57 = vld [vmem:[#allocation7 + $0x548] sm:$0xf0]  ;;  %v4622_v50 = vld [vmem:[#allocation5 + $0xbc] sm:$0xf0] }
 0x194   : > { %v5139_v48 = vld [vmem:[#allocation5 + $0xac] sm:$0xf] }
 0x195   : > { %2159 = vmatpush.bf16.msra.mxu2 %v3917_v4  ;;  %v3821_v4 = vor.u32 %v5181_v61, %v3820_v60  ;;  %2356 = vmatmul.bf16.vlgmr.msra.gmra.mxu0 %v5995_v49  ;;  %v3741_v60 = vor.u32 %v5161_v51, %v3740_v45  ;;  %v4440_v45 = vld [vmem:[#allocation7 + $0x580] sm:$0xf]  ;;  %v4648_v51 = vld [vmem:[#allocation5 + $0xd8] sm:$0xf] }
 0x196   : > { %2608 = vmatpush.bf16.msrb.mxu0 %v4673_v58  ;;  %v4572_v58 = vld [vmem:[#allocation5 + $0x50] sm:$0xf] }
 0x197   : > { %2379 = vmatpush.bf16.msra.mxu1 %v4269_v62  ;;  %2389 = vmatpush.bf16.msra.mxu3 %v4489_v5  ;;  %v4573_v62 = vor.u32 %v5130_v59, %v4572_v58  ;;  %v5322_v5 = vld [vmem:[#allocation7 + $0x520] sm:$0xf0]  ;;  %v4649_v58 = vor.u32 %v5147_v52, %v4648_v51  ;;  %v4420_v59 = vld [vmem:[#allocation7 + $0x558] sm:$0xf]  ;;  %v5289_v52 = vld [vmem:[#allocation7 + $0x41c] sm:$0xf] }
 0x199   : > { %2160 = vmatpush.bf16.msra.mxu2 %v3897_v21  ;;  %v4633_v21 = vor.u32 %v5145_v16, %v4632_v15  ;;  %v4600_v15 = vld [vmem:[#allocation5 + $0x80] sm:$0xf]  ;;  %v4501_v16 = vor.u32 %v5351_v10, %v4500_v2  ;;  %v5142_v10 = vld [vmem:[#allocation5 + $0xc0] sm:$0xf0] }
 0x19a   : > { %2609 = vmatpush.bf16.msrb.mxu0 %v4653_v6  ;;  %v4552_v6 = vld [vmem:[#allocation5 + $0x28] sm:$0xf] }
 0x19b   : > { %2380 = vmatpush.bf16.msra.mxu1 %v4249_v9  ;;  %2390 = vmatpush.bf16.msra.mxu3 %v4469_v20  ;;  %v4553_v9 = vor.u32 %v5125_v7, %v4552_v6  ;;  %v5346_v20 = vld [vmem:[#allocation7 + $0x5e0] sm:$0xf0]  ;;  %v5129_v6 = vld [vmem:[#allocation5 + $0x5c] sm:$0xf]  ;;  %v4582_v7 = vld [vmem:[#allocation5 + $0x6c] sm:$0xf0] }
 0x19c   : > { %2161 = vmatmul.bf16.vlgmr.msra.gmra.mxu2 %v5995_v49  ;;  %v4681_v49 = vor.u32 %v5156_v23, %v4680_v22  ;;  %v4532_v22 = vld [vmem:[#allocation5] sm:$0xf]  ;;  %v5120_v23 = vld [vmem:[#allocation5 + $0x10] sm:$0xf0] }
 0x19d   : > { %2205 = vmatpush.bf16.msrb.mxu2 %v3881_v26  ;;  %v4229_v26 = vor.u32 %v5282_v18, %v4228_v17  ;;  %v4480_v17 = vld [vmem:[#allocation7 + $0x5d0] sm:$0xf]  ;;  %v4685_v18 = vor.u32 %v5154_v11, %v4682_v13  ;;  %v4533_v24 = vor.u32 %v5120_v23, %v4532_v22  ;;  %v4585_v11 = vor.u32 %v5129_v6, %v4582_v7  ;;  %v5137_v13 = vld [vmem:[#allocation5 + $0x98] sm:$0xf0]  ;;  %v4588_v22 = vld [vmem:[#allocation5 + $0x60] sm:$0xf] }
 0x19e   : > { %2610 = vmatpush.bf16.msrb.mxu0 %v4633_v21  ;;  %v4481_v29 = vor.u32 %v5346_v20, %v4480_v17  ;;  %v5124_v20 = vld [vmem:[#allocation5 + $0x34] sm:$0xf]  ;;  %v4188_v7 = vld [vmem:[#allocation7 + $0x380] sm:$0xf] }
 0x19f   : > { %2381 = vmatpush.bf16.msra.mxu1 %v4229_v26  ;;  %2391 = vmatpush.bf16.msra.mxu3 %v4449_v33  ;;  %v4662_v26 = vld [vmem:[#allocation5 + $0x10c] sm:$0xf0]  ;;  %v5131_v33 = vld [vmem:[#allocation5 + $0x68] sm:$0xf0] }
 0x1a0   : > { %v4665_v31 = vor.u32 %v5149_v25, %v4662_v26  ;;  %v4581_v36 = vor.u32 %v5131_v33, %v4580_v28  ;;  %v5132_v25 = vld [vmem:[#allocation5 + $0x70] sm:$0xf0]  ;;  %v4342_v28 = vld [vmem:[#allocation7 + $0x4cc] sm:$0xf0] }
 0x1a1   : > { %2206 = vmatpush.bf16.msrb.mxu2 %v3861_v39  ;;  %v4428_v39 = vld [vmem:[#allocation7 + $0x560] sm:$0xf] }
 0x1a2   : > { %2611 = vmatpush.bf16.msrb.mxu0 %v4613_v34  ;;  %v4429_v46 = vor.u32 %v5332_v40, %v4428_v39  ;;  %2382 = vmatmul.bf16.vlgmr.msra.gmra.mxu1 %v6001_v12  ;;  %v4460_v34 = vld [vmem:[#allocation7 + $0x5a8] sm:$0xf]  ;;  %v4560_v39 = vld [vmem:[#allocation5 + $0x30] sm:$0xf]  ;;  %v5126_v40 = vld [vmem:[#allocation5 + $0x40] sm:$0xf0] }
 0x1a3   : > { %2634 = vmatpush.bf16.msrb.mxu1 %v4681_v49  ;;  %v4688_v49 = vld [vmem:[#allocation5 + $0x128] sm:$0xf]  ;;  %v4461_v42 = vor.u32 %v5341_v35, %v4460_v34  ;;  %v5127_v34 = vld [vmem:[#allocation5 + $0x48] sm:$0xf0] }
 0x1a4   : > { %2392 = vmatpush.bf16.msra.mxu3 %v4429_v46  ;;  %v5336_v46 = vld [vmem:[#allocation7 + $0x590] sm:$0xf0] }
 0x1a5   : > { %2207 = vmatpush.bf16.msrb.mxu2 %v3841_v56  ;;  %v4408_v56 = vld [vmem:[#allocation7 + $0x538] sm:$0xf] }
 0x1a6   : > { %2612 = vmatpush.bf16.msrb.mxu0 %v4593_v47  ;;  %v4409_v61 = vor.u32 %v5327_v57, %v4408_v56  ;;  %v4561_v47 = vor.u32 %v5126_v40, %v4560_v39  ;;  %v4441_v56 = vor.u32 %v5336_v46, %v4440_v45  ;;  %v4625_v57 = vor.u32 %v5139_v48, %v4622_v50  ;;  %v5294_v45 = vld [vmem:[#allocation7 + $0x444] sm:$0xf]  ;;  %v4282_v46 = vld [vmem:[#allocation7 + $0x454] sm:$0xf0]  ;;  %v2097_v48 = vpop.f32.mrf.mxu0 }
 0x1a7   : > { %2635 = vmatpush.bf16.msrb.mxu1 %v4661_v14  ;;  %v5152_v14 = vld [vmem:[#allocation5 + $0x110] sm:$0xf0]  ;;  %v4285_v51 = vor.u32 %v5294_v45, %v4282_v46 }
 0x1a8   : > { %2393 = vmatpush.bf16.msra.mxu3 %v4409_v61  ;;  %v5148_v46 = vld [vmem:[#allocation5 + $0xf4] sm:$0xf] }
 0x1a9   : > { %2208 = vmatpush.bf16.msrb.mxu2 %v3821_v4  ;;  %v4388_v4 = vld [vmem:[#allocation7 + $0x510] sm:$0xf] }
 0x1aa   : > { %2613 = vmatpush.bf16.msrb.mxu0 %v4573_v62  ;;  %v4389_v8 = vor.u32 %v5322_v5, %v4388_v4  ;;  %v5134_v62 = vld [vmem:[#allocation5 + $0x84] sm:$0xf]  ;;  %v4629_v5 = vor.u32 %v5142_v10, %v4628_v0  ;;  %v4222_v0 = vld [vmem:[#allocation7 + $0x3dc] sm:$0xf0]  ;;  %v5277_v10 = vld [vmem:[#allocation7 + $0x3b8] sm:$0xf0] }
 0x1ab   : > { %2636 = vmatpush.bf16.msrb.mxu1 %v4641_v55  ;;  %v5121_v55 = vld [vmem:[#allocation5 + $0x18] sm:$0xf0]  ;;  %v4605_v2 = vor.u32 %v5134_v62, %v4602_v63  ;;  %v5326_v4 = vld [vmem:[#allocation7 + $0x540] sm:$0xf0]  ;;  %v5279_v63 = vld [vmem:[#allocation7 + $0x3cc] sm:$0xf] }
 0x1ac   : > { %2394 = vmatpush.bf16.msra.mxu3 %v4389_v8  ;;  %v4541_v61 = vor.u32 %v5121_v55, %v4540_v53  ;;  %v4608_v8 = vld [vmem:[#allocation5 + $0x88] sm:$0xf]  ;;  %v4262_v53 = vld [vmem:[#allocation7 + $0x42c] sm:$0xf0] }
 0x1ad   : > { %2209 = vmatpush.bf16.msrb.mxu2 %v3801_v19  ;;  %v5136_v19 = vld [vmem:[#allocation5 + $0x90] sm:$0xf0]  ;;  %v4609_v17 = vor.u32 %v5137_v13, %v4608_v8  ;;  %v4265_v55 = vor.u32 %v5289_v52, %v4262_v53  ;;  %v5267_v13 = vld [vmem:[#allocation7 + $0x368] sm:$0xf0]  ;;  %v4634_v53 = vld [vmem:[#allocation5 + $0xdc] sm:$0xf0] }
 0x1ae   : > { %2614 = vmatpush.bf16.msrb.mxu0 %v4553_v9  ;;  %v4601_v21 = vor.u32 %v5136_v19, %v4600_v15  ;;  %v4380_v15 = vld [vmem:[#allocation7 + $0x508] sm:$0xf]  ;;  %v4362_v19 = vld [vmem:[#allocation7 + $0x4f4] sm:$0xf0]  ;;  %v5272_v8 = vld [vmem:[#allocation7 + $0x390] sm:$0xf0] }
 0x1af   : > { %2637 = vmatpush.bf16.msrb.mxu1 %v4621_v3  ;;  %2395 = vmatmul.bf16.vlgmr.msra.gmra.mxu3 %v6007_v54  ;;  %v4400_v3 = vld [vmem:[#allocation7 + $0x530] sm:$0xf]  ;;  %v5143_v52 = vld [vmem:[#allocation5 + $0xcc] sm:$0xf] }
 0x1b0   : > { %2647 = vmatpush.bf16.msrb.mxu3 %v4685_v18  ;;  %v4401_v9 = vor.u32 %v5326_v4, %v4400_v3  ;;  %v5314_v18 = vld [vmem:[#allocation7 + $0x4e4] sm:$0xf]  ;;  %v4225_v3 = vor.u32 %v5279_v63, %v4222_v0  ;;  %v4594_v63 = vld [vmem:[#allocation5 + $0x8c] sm:$0xf0] }
 0x1b1   : > { %2210 = vmatpush.bf16.msrb.mxu2 %v3781_v32  ;;  %v4689_v32 = vor.u32 %v5157_v27, %v4688_v49  ;;  %v4365_v26 = vor.u32 %v5314_v18, %v4362_v19  ;;  %v4589_v49 = vor.u32 %v5132_v25, %v4588_v22  ;;  %v5309_v27 = vld [vmem:[#allocation7 + $0x4bc] sm:$0xf]  ;;  %v4148_v19 = vld [vmem:[#allocation7 + $0x330] sm:$0xf]  ;;  %v4128_v22 = vld [vmem:[#allocation7 + $0x308] sm:$0xf] }
 0x1b2   : > { %2615 = vmatpush.bf16.msrb.mxu0 %v4533_v24  ;;  %v4345_v35 = vor.u32 %v5309_v27, %v4342_v28  ;;  %v5252_v27 = vld [vmem:[#allocation7 + $0x2f0] sm:$0xf0] }
 0x1b3   : > { %2638 = vmatpush.bf16.msrb.mxu1 %v4601_v21  ;;  %v4562_v21 = vld [vmem:[#allocation5 + $0x44] sm:$0xf0] }
 0x1b4   : > { %2648 = vmatpush.bf16.msrb.mxu3 %v4665_v31  ;;  %v4565_v24 = vor.u32 %v5124_v20, %v4562_v21  ;;  %v4542_v31 = vld [vmem:[#allocation5 + $0x1c] sm:$0xf0]  ;;  %v5262_v20 = vld [vmem:[#allocation7 + $0x340] sm:$0xf0] }
 0x1b5   : > { %2211 = vmatpush.bf16.msrb.mxu2 %v3761_v44  ;;  %v4669_v44 = vor.u32 %v5152_v14, %v4668_v38  ;;  %v4548_v38 = vld [vmem:[#allocation5 + $0x10] sm:$0xf]  ;;  %v5122_v14 = vld [vmem:[#allocation5 + $0x20] sm:$0xf0]  ;;  %v4149_v21 = vor.u32 %v5262_v20, %v4148_v19 }
 0x1b6   : > { %2660 = vmatpush.bf16.msra.mxu0 %v4689_v32  ;;  %v4568_v32 = vld [vmem:[#allocation5 + $0x38] sm:$0xf]  ;;  %v4549_v39 = vor.u32 %v5122_v14, %v4548_v38 }
 0x1b7   : > { %2639 = vmatpush.bf16.msrb.mxu1 %v4581_v36  ;;  %v5304_v36 = vld [vmem:[#allocation7 + $0x494] sm:$0xf] }
 0x1b9   : > { %2212 = vmatpush.bf16.msrb.mxu2 %v3741_v60  ;;  %v5331_v60 = vld [vmem:[#allocation7 + $0x568] sm:$0xf0] }
 0x1ba   : > { %2661 = vmatpush.bf16.msra.mxu0 %v4669_v44 }
 0x1bb   : > { %2640 = vmatpush.bf16.msrb.mxu1 %v4561_v47  ;;  %v2084_v47 = vpop.f32.mrf.mxu3 }
 0x1bc   : > { %2213 = vmatmul.bf16.vlgmr.msrb.gmra.mxu2 %v5992_v41  ;;  %v5144_v41 = vld [vmem:[#allocation5 + $0xd4] sm:$0xf]  ;;  %v2098_v50 = vadd.f32 %v2097_v48, %v2084_v47  ;;  %v4654_v47 = vld [vmem:[#allocation5 + $0x104] sm:$0xf0] }
 0x1bd   : > { %2257 = vmatpush.bf16.msra.mxu2 %v4521_v1  ;;  %v4645_v43 = vor.u32 %v5144_v41, %v4642_v37  ;;  %v4421_v1 = vor.u32 %v5331_v60, %v4420_v59  ;;  %v4569_v41 = vor.u32 %v5127_v34, %v4568_v32  ;;  %v4322_v37 = vld [vmem:[#allocation7 + $0x4a4] sm:$0xf0] }
 0x1be   : > { %2662 = vmatpush.bf16.msra.mxu0 %v4649_v58  ;;  %v4325_v40 = vor.u32 %v5304_v36, %v4322_v37  ;;  %v4242_v58 = vld [vmem:[#allocation7 + $0x404] sm:$0xf0]  ;;  %v5242_v37 = vld [vmem:[#allocation7 + $0x2a0] sm:$0xf0] }
 0x1bf   : > { %2649 = vmatpush.bf16.msrb.mxu3 %v4645_v43  ;;  %2641 = vmatpush.bf16.msrb.mxu1 %v4541_v61  ;;  %v4302_v43 = vld [vmem:[#allocation7 + $0x47c] sm:$0xf0]  ;;  %v2099_v61 = vpop.f32.mrf.mxu0 }
 0x1c1   : > { %2258 = vmatpush.bf16.msra.mxu2 %v4501_v16  ;;  %v5321_v16 = vld [vmem:[#allocation7 + $0x518] sm:$0xf0] }
 0x1c2   : > { %2663 = vmatpush.bf16.msra.mxu0 %v4629_v5  ;;  %v4381_v23 = vor.u32 %v5321_v16, %v4380_v15 }
 0x1c3   : > { %2650 = vmatpush.bf16.msrb.mxu3 %v4625_v57  ;;  %v5284_v57 = vld [vmem:[#allocation7 + $0x3f4] sm:$0xf]  ;;  %v2086_v59 = vpop.f32.mrf.mxu3 }
 0x1c4   : > { %v4245_v62 = vor.u32 %v5284_v57, %v4242_v58  ;;  %v4614_v57 = vld [vmem:[#allocation5 + $0xb4] sm:$0xf0] }
 0x1c5   : > { %2259 = vmatpush.bf16.msra.mxu2 %v4481_v29  ;;  %v5119_v29 = vld [vmem:[#allocation5 + $0xc] sm:$0xf] }
 0x1c6   : > { %2664 = vmatpush.bf16.msra.mxu0 %v4609_v17  ;;  %v4545_v33 = vor.u32 %v5119_v29, %v4542_v31  ;;  %v5247_v29 = vld [vmem:[#allocation7 + $0x2c8] sm:$0xf0] }
 0x1c7   : > { %2651 = vmatpush.bf16.msrb.mxu3 %v4605_v2  ;;  %v4208_v2 = vld [vmem:[#allocation7 + $0x3a8] sm:$0xf]  ;;  %v6040_v15 = vpop.f32.mrf.mxu0 }
 0x1c8   : > { %v4209_v4 = vor.u32 %v5277_v10, %v4208_v2  ;;  %v5128_v2 = vld [vmem:[#allocation5 + $0x54] sm:$0xf]  ;;  %v4574_v10 = vld [vmem:[#allocation5 + $0x64] sm:$0xf0] }
 0x1c9   : > { %2260 = vmatpush.bf16.msra.mxu2 %v4461_v42  ;;  %v5299_v42 = vld [vmem:[#allocation7 + $0x46c] sm:$0xf] }
 0x1ca   : > { %2665 = vmatpush.bf16.msra.mxu0 %v4589_v49  ;;  %v4305_v44 = vor.u32 %v5299_v42, %v4302_v43  ;;  %v4108_v49 = vld [vmem:[#allocation7 + $0x2e0] sm:$0xf] }
 0x1cb   : > { %2652 = vmatpush.bf16.msrb.mxu3 %v4585_v11  ;;  %v2136_v6 = vpop.f32.mrf.mxu3  ;;  %v4168_v11 = vld [vmem:[#allocation7 + $0x358] sm:$0xf]  ;;  %v4109_v28 = vor.u32 %v5252_v27, %v4108_v49  ;;  %v4748_v49 = vld [vmem:[#allocation8 + $0x70] sm:$0xf] }
 0x1cc   : > { %v4169_v17 = vor.u32 %v5267_v13, %v4168_v11  ;;  %v5405_v11 = vld [vmem:[#allocation8 + $0x174] sm:$0xf0] }
 0x1cd   : > { %2261 = vmatpush.bf16.msra.mxu2 %v4441_v56  ;;  %v5373_v27 = vld [vmem:[#allocation8 + $0x74] sm:$0xf0] }
 0x1ce   : > { %2666 = vmatpush.bf16.msra.mxu0 %v4569_v41  ;;  %v4068_v41 = vld [vmem:[#allocation7 + $0x290] sm:$0xf] }
 0x1cf   : > { %2653 = vmatpush.bf16.msrb.mxu3 %v4565_v24  ;;  %v2151_v24 = vpop.f32.mrf.mxu0  ;;  %v4069_v42 = vor.u32 %v5242_v37, %v4068_v41  ;;  %v4749_v37 = vor.u32 %v5373_v27, %v4748_v49 }
 0x1d1   : > { %2262 = vmatpush.bf16.msra.mxu2 %v4421_v1 }
 0x1d2   : > { %2667 = vmatpush.bf16.msra.mxu0 %v4549_v39  ;;  %v5153_v39 = vld [vmem:[#allocation5 + $0x11c] sm:$0xf] }
 0x1d3   : > { %2654 = vmatpush.bf16.msrb.mxu3 %v4545_v33  ;;  %v2138_v18 = vpop.f32.mrf.mxu3 }
 0x1d4   : > { %v5403_v18 = vld [vmem:[#allocation8 + $0x164] sm:$0xf0] }
 0x1d5   : > { %2263 = vmatpush.bf16.msra.mxu2 %v4401_v9  ;;  %v4189_v9 = vor.u32 %v5272_v8, %v4188_v7  ;;  %v4554_v7 = vld [vmem:[#allocation5 + $0x3c] sm:$0xf0]  ;;  %v4876_v8 = vld [vmem:[#allocation8 + $0x170] sm:$0xf] }
 0x1d6   : > { %v4877_v13 = vor.u32 %v5405_v11, %v4876_v8  ;;  %v4708_v11 = vld [vmem:[#allocation8 + $0x20] sm:$0xf] }
 0x1d7   : > { %v6046_v32 = vpop.f32.mrf.mxu0 }
 0x1d8   : > { %3212 = vmatpush.bf16.msra.mxu3 %v4877_v13  ;;  %v5363_v13 = vld [vmem:[#allocation8 + $0x24] sm:$0xf0] }
 0x1d9   : > { %2264 = vmatpush.bf16.msra.mxu2 %v4381_v23  ;;  %v5257_v23 = vld [vmem:[#allocation7 + $0x318] sm:$0xf0] }
 0x1db   : > { %v2188_v38 = vpop.f32.mrf.mxu3 }
 0x1dc   : > { %2265 = vmatmul.bf16.vlgmr.msra.gmra.mxu2 %v6007_v54  ;;  %v2123_v54 = vpop.f32.mrf.mxu1 }
 0x1dd   : > { %2309 = vmatpush.bf16.msrb.mxu2 %v4365_v26  ;;  %v4129_v26 = vor.u32 %v5257_v23, %v4128_v22  ;;  %v5118_v22 = vld [vmem:[#allocation5 + $0x4] sm:$0xf]  ;;  %v4534_v23 = vld [vmem:[#allocation5 + $0x14] sm:$0xf0] }
 0x1df   : > { %v725_v56 = vpop.f32.mrf.mxu2  ;;  %v2203_v45 = vpop.f32.mrf.mxu0 }
 0x1e0   : > { %v6035_v60 = vpack.c.bf16 %v725_v56, %v725_v56  ;;  %v5138_v56 = vld [vmem:[#allocation5 + $0xa4] sm:$0xf]  ;;  %v5399_v45 = vld [vmem:[#allocation8 + $0x144] sm:$0xf0] }
 0x1e1   : > { %2310 = vmatpush.bf16.msrb.mxu2 %v4345_v35  ;;  %v4617_v59 = vor.u32 %v5138_v56, %v4614_v57  ;;  %v4724_v56 = vld [vmem:[#allocation8 + $0x40] sm:$0xf]  ;;  %v5367_v57 = vld [vmem:[#allocation8 + $0x44] sm:$0xf0] }
 0x1e2   : > { %2616 = vmatmul.bf16.vlgmr.msrb.gmra.mxu0 %v6035_v60  ;;  %2642 = vmatmul.bf16.vlgmr.msrb.gmra.mxu1 %v6035_v60 }
 0x1e3   : > { %2655 = vmatmul.bf16.vlgmr.msrb.gmra.mxu3 %v6035_v60 }
 0x1e4   : > { %v2125_v1 = vpop.f32.mrf.mxu1 }
 0x1e5   : > { %2311 = vmatpush.bf16.msrb.mxu2 %v4325_v40  ;;  %v4674_v40 = vld [vmem:[#allocation5 + $0x12c] sm:$0xf0] }
 0x1e6   : > { %v4677_v43 = vor.u32 %v5153_v39, %v4674_v40  ;;  %v4740_v39 = vld [vmem:[#allocation8 + $0x60] sm:$0xf] }
 0x1e7   : > { %v727_v5 = vpop.f32.mrf.mxu2  ;;  %v4932_v40 = vld [vmem:[#allocation8 + $0x1e0] sm:$0xf] }
 0x1e9   : > { %2312 = vmatpush.bf16.msrb.mxu2 %v4305_v44 }
 0x1ec   : > { %v6042_v16 = vpop.f32.mrf.mxu1 }
 0x1ed   : > { %2313 = vmatpush.bf16.msrb.mxu2 %v4285_v51  ;;  %v2190_v51 = vpop.f32.mrf.mxu3 }
 0x1ee   : > { %v4732_v51 = vld [vmem:[#allocation8 + $0x50] sm:$0xf] }
 0x1f1   : > { %2314 = vmatpush.bf16.msrb.mxu2 %v4265_v55  ;;  %v6053_v55 = vpop.f32.mrf.mxu0 }
 0x1f2   : > { %2668 = vmatmul.bf16.vlgmr.msra.gmra.mxu0 %v6035_v60 }
 0x1f4   : > { %v2177_v25 = vpop.f32.mrf.mxu1 }
 0x1f5   : > { %2315 = vmatpush.bf16.msrb.mxu2 %v4245_v62  ;;  %v6055_v61 = vpop.f32.mrf.mxu3  ;;  %v5133_v62 = vld [vmem:[#allocation5 + $0x7c] sm:$0xf] }
 0x1f6   : > { %v4597_v0 = vor.u32 %v5133_v62, %v4594_v63  ;;  %v4725_v62 = vor.u32 %v5367_v57, %v4724_v56  ;;  %v4878_v56 = vld [vmem:[#allocation8 + $0x178] sm:$0xf0] }
 0x1f9   : > { %2316 = vmatpush.bf16.msrb.mxu2 %v4225_v3  ;;  %v2255_v1 = vpop.f32.mrf.mxu0 }
 0x1fc   : > { %2317 = vmatmul.bf16.vlgmr.msrb.gmra.mxu2 %v6001_v12  ;;  %v4088_v12 = vld [vmem:[#allocation7 + $0x2b8] sm:$0xf]  ;;  %v6048_v34 = vpop.f32.mrf.mxu1 }
 0x1fd   : > { %2361 = vmatpush.bf16.msra.mxu2 %v4209_v4  ;;  %v4089_v35 = vor.u32 %v5247_v29, %v4088_v12  ;;  %v2242_v4 = vpop.f32.mrf.mxu3  ;;  %v4940_v12 = vld [vmem:[#allocation8 + $0x1f0] sm:$0xf]  ;;  %v5421_v29 = vld [vmem:[#allocation8 + $0x1f4] sm:$0xf0] }
 0x1fe   : > { %v5397_v4 = vld [vmem:[#allocation8 + $0x134] sm:$0xf0] }
 0x1ff   : > { %v2110_v31 = vpop.f32.mrf.mxu2 }
 0x200   : > { %v2111_v33 = vadd.f32 %v2110_v31, %v2098_v50  ;;  %v4657_v50 = vor.u32 %v5148_v46, %v4654_v47  ;;  %v4537_v31 = vor.u32 %v5118_v22, %v4534_v23  ;;  %v4916_v22 = vld [vmem:[#allocation8 + $0x1c0] sm:$0xf]  ;;  %v5415_v23 = vld [vmem:[#allocation8 + $0x1c4] sm:$0xf0] }
 0x201   : > { %2362 = vmatpush.bf16.msra.mxu2 %v4189_v9  ;;  %v4917_v49 = vor.u32 %v5415_v23, %v4916_v22  ;;  %v4854_v22 = vld [vmem:[#allocation8 + $0x148] sm:$0xf0] }
 0x202   : > { %v2124_v36 = vadd.f32 %v2123_v54, %v2111_v33  ;;  %v4637_v54 = vor.u32 %v5143_v52, %v4634_v53  ;;  %v5369_v52 = vld [vmem:[#allocation8 + $0x54] sm:$0xf0] }
 0x204   : > { %v6050_v14 = vadd.f32 %v2136_v6, %v2124_v36  ;;  %v2229_v48 = vpop.f32.mrf.mxu1  ;;  %v5123_v6 = vld [vmem:[#allocation5 + $0x2c] sm:$0xf] }
 0x205   : > { %2363 = vmatpush.bf16.msra.mxu2 %v4169_v17  ;;  %v4868_v17 = vld [vmem:[#allocation8 + $0x160] sm:$0xf]  ;;  %v4557_v19 = vor.u32 %v5123_v6, %v4554_v7  ;;  %v2292_v33 = vpop.f32.mrf.mxu3  ;;  %v5417_v6 = vld [vmem:[#allocation8 + $0x1d4] sm:$0xf0] }
 0x206   : > { %v4869_v25 = vor.u32 %v5403_v18, %v4868_v17  ;;  %v4836_v17 = vld [vmem:[#allocation8 + $0x120] sm:$0xf] }
 0x207   : > { %v2112_v44 = vpop.f32.mrf.mxu2 }
 0x208   : > { %3213 = vmatpush.bf16.msra.mxu3 %v4869_v25  ;;  %v4852_v44 = vld [vmem:[#allocation8 + $0x140] sm:$0xf] }
 0x209   : > { %2364 = vmatpush.bf16.msra.mxu2 %v4149_v21  ;;  %v6059_v21 = vpop.f32.mrf.mxu0 }
 0x20c   : > { %v2279_v58 = vpop.f32.mrf.mxu1 }
 0x20d   : > { %2365 = vmatpush.bf16.msra.mxu2 %v4129_v26  ;;  %v6066_v41 = vadd.f32 %v2292_v33, %v2279_v58  ;;  %v2294_v53 = vpop.f32.mrf.mxu3  ;;  %v5393_v33 = vld [vmem:[#allocation8 + $0x114] sm:$0xf0] }
 0x20f   : > { %v6082_v53 = vadd.f32 %v6059_v21, %v6066_v41  ;;  %v5400_v41 = vld [vmem:[#allocation8 + $0x154] sm:$0xf] }
 0x211   : > { %2366 = vmatpush.bf16.msra.mxu2 %v4109_v28  ;;  %v5401_v28 = vld [vmem:[#allocation8 + $0x154] sm:$0xf0]  ;;  %v2307_v47 = vpop.f32.mrf.mxu0 }
 0x214   : > { %v2281_v3 = vpop.f32.mrf.mxu1 }
 0x215   : > { %2367 = vmatpush.bf16.msra.mxu2 %v4089_v35  ;;  %v4941_v35 = vor.u32 %v5421_v29, %v4940_v12  ;;  %v2344_v63 = vpop.f32.mrf.mxu3  ;;  %v4844_v3 = vld [vmem:[#allocation8 + $0x130] sm:$0xf]  ;;  %v5361_v12 = vld [vmem:[#allocation8 + $0x14] sm:$0xf0] }
 0x216   : > { %v4845_v8 = vor.u32 %v5397_v4, %v4844_v3  ;;  %v4828_v29 = vld [vmem:[#allocation8 + $0x110] sm:$0xf]  ;;  %v4870_v3 = vld [vmem:[#allocation8 + $0x168] sm:$0xf0]  ;;  %v5435_v4 = vld [vmem:[#allocation8 + $0x264] sm:$0xf0] }
 0x217   : > { %3225 = vmatpush.bf16.msrb.mxu0 %v4941_v35  ;;  %v4908_v35 = vld [vmem:[#allocation8 + $0x1b0] sm:$0xf] }
 0x219   : > { %2368 = vmatpush.bf16.msra.mxu2 %v4069_v42  ;;  %v5419_v42 = vld [vmem:[#allocation8 + $0x1e4] sm:$0xf0]  ;;  %v2357_v58 = vpop.f32.mrf.mxu0 }
 0x21a   : > { %v4933_v46 = vor.u32 %v5419_v42, %v4932_v40  ;;  %v4820_v40 = vld [vmem:[#allocation8 + $0x100] sm:$0xf]  ;;  %v5391_v42 = vld [vmem:[#allocation8 + $0x104] sm:$0xf0] }
 0x21c   : > { %2369 = vmatmul.bf16.vlgmr.msra.gmra.mxu2 %v6012_v30  ;;  %v4577_v30 = vor.u32 %v5128_v2, %v4574_v10  ;;  %v6061_v24 = vpop.f32.mrf.mxu1  ;;  %3226 = vmatpush.bf16.msrb.mxu0 %v4933_v46  ;;  %v4716_v2 = vld [vmem:[#allocation8 + $0x30] sm:$0xf]  ;;  %v5365_v10 = vld [vmem:[#allocation8 + $0x34] sm:$0xf0]  ;;  %v4821_v46 = vor.u32 %v5391_v42, %v4820_v40 }
 0x21d   : > { %2621 = vmatpush.bf16.msrb.mxu2 %v4677_v43  ;;  %v5371_v43 = vld [vmem:[#allocation8 + $0x64] sm:$0xf0]  ;;  %v2346_v25 = vpop.f32.mrf.mxu3  ;;  %v5385_v40 = vld [vmem:[#allocation8 + $0xd4] sm:$0xf0] }
 0x21e   : > { %v4980_v25 = vld [vmem:[#allocation8 + $0x240] sm:$0xf] }
 0x21f   : > { %v2162_v5 = vpop.f32.mrf.mxu2 }
 0x220   : > { %v2163_v9 = vadd.f32 %v2162_v5, %v6040_v15  ;;  %v4860_v15 = vld [vmem:[#allocation8 + $0x150] sm:$0xf] }
 0x221   : > { %2622 = vmatpush.bf16.msrb.mxu2 %v4657_v50  ;;  %v4853_v50 = vor.u32 %v5399_v45, %v4852_v44  ;;  %v2359_v1 = vpop.f32.mrf.mxu0  ;;  %v4924_v5 = vld [vmem:[#allocation8 + $0x1d0] sm:$0xf]  ;;  %v5411_v44 = vld [vmem:[#allocation8 + $0x1a4] sm:$0xf0] }
 0x222   : > { %v2176_v20 = vadd.f32 %v6042_v16, %v2163_v9  ;;  %v4925_v9 = vor.u32 %v5417_v6, %v4924_v5  ;;  %v5437_v1 = vld [vmem:[#allocation8 + $0x274] sm:$0xf0]  ;;  %v4862_v6 = vld [vmem:[#allocation8 + $0x158] sm:$0xf0] }
 0x224   : > { %v2189_v26 = vadd.f32 %v2188_v38, %v2176_v20  ;;  %v4861_v38 = vor.u32 %v5401_v28, %v4860_v15  ;;  %v2333_v48 = vpop.f32.mrf.mxu1  ;;  %v5395_v20 = vld [vmem:[#allocation8 + $0x124] sm:$0xf0]  ;;  %3227 = vmatpush.bf16.msrb.mxu0 %v4925_v9  ;;  %v5433_v9 = vld [vmem:[#allocation8 + $0x254] sm:$0xf0] }
 0x225   : > { %2623 = vmatpush.bf16.msrb.mxu2 %v4637_v54  ;;  %v4733_v54 = vor.u32 %v5369_v52, %v4732_v51  ;;  %v4892_v48 = vld [vmem:[#allocation8 + $0x190] sm:$0xf]  ;;  %v4884_v51 = vld [vmem:[#allocation8 + $0x180] sm:$0xf]  ;;  %v5407_v52 = vld [vmem:[#allocation8 + $0x184] sm:$0xf0] }
 0x226   : > { %v6064_v16 = vadd.f32 %v6046_v32, %v2189_v26  ;;  %v4741_v32 = vor.u32 %v5371_v43, %v4740_v39  ;;  %3214 = vmatpush.bf16.msra.mxu3 %v4861_v38  ;;  %v4837_v26 = vor.u32 %v5395_v20, %v4836_v17  ;;  %v4692_v38 = vld [vmem:[#allocation8] sm:$0xf]  ;;  %v4885_v57 = vor.u32 %v5407_v52, %v4884_v51  ;;  %v4812_v17 = vld [vmem:[#allocation8 + $0xf0] sm:$0xf]  ;;  %v5383_v52 = vld [vmem:[#allocation8 + $0xc4] sm:$0xf0] }
 0x227   : > { %v2164_v36 = vpop.f32.mrf.mxu2  ;;  %v4900_v43 = vld [vmem:[#allocation8 + $0x1a0] sm:$0xf] }
 0x228   : > { %3228 = vmatpush.bf16.msrb.mxu0 %v4917_v49  ;;  %v4829_v36 = vor.u32 %v5393_v33, %v4828_v29  ;;  %v4901_v47 = vor.u32 %v5411_v44, %v4900_v43  ;;  %v5387_v29 = vld [vmem:[#allocation8 + $0xe4] sm:$0xf0]  ;;  %v4788_v51 = vld [vmem:[#allocation8 + $0xc0] sm:$0xf] }
 0x229   : > { %2624 = vmatpush.bf16.msrb.mxu2 %v4617_v59 }
 0x22a   : > { %3215 = vmatpush.bf16.msra.mxu3 %v4853_v50 }
 0x22c   : > { %v6069_v59 = vpop.f32.mrf.mxu1 }
 0x22d   : > { %2625 = vmatpush.bf16.msrb.mxu2 %v4597_v0  ;;  %v6071_v0 = vadd.f32 %v2357_v58, %v2344_v63  ;;  %v5004_v63 = vld [vmem:[#allocation8 + $0x270] sm:$0xf] }
 0x22e   : > { %3216 = vmatpush.bf16.msra.mxu3 %v4845_v8  ;;  %v4988_v8 = vld [vmem:[#allocation8 + $0x250] sm:$0xf] }
 0x231   : > { %2626 = vmatpush.bf16.msrb.mxu2 %v4577_v30  ;;  %v4717_v30 = vor.u32 %v5365_v10, %v4716_v2  ;;  %v5005_v2 = vor.u32 %v5437_v1, %v5004_v63  ;;  %v5402_v10 = vld [vmem:[#allocation8 + $0x164] sm:$0xf]  ;;  %v4830_v63 = vld [vmem:[#allocation8 + $0x118] sm:$0xf0]  ;;  %v4789_v1 = vor.u32 %v5383_v52, %v4788_v51 }
 0x232   : > { %3217 = vmatpush.bf16.msra.mxu3 %v4837_v26  ;;  %v6078_v45 = vpop.f32.mrf.mxu3  ;;  %v5431_v26 = vld [vmem:[#allocation8 + $0x244] sm:$0xf0] }
 0x235   : > { %2627 = vmatpush.bf16.msrb.mxu2 %v4557_v19  ;;  %v4709_v19 = vor.u32 %v5363_v13, %v4708_v11  ;;  %v6087_v11 = vld [vmem:[%s6171_s7] sm:$0x1f]  ;;  %v4989_v13 = vor.u32 %v5433_v9, %v4988_v8 }
 0x236   : > { %3218 = vmatpush.bf16.msra.mxu3 %v4829_v36  ;;  %v2675_v49 = vperm.slane %v6087_v11, 0  ;;  %v4972_v36 = vld [vmem:[#allocation8 + $0x230] sm:$0xf] }
 0x239   : > { %2628 = vmatpush.bf16.msrb.mxu2 %v4537_v31 }
 0x23a   : > { %3219 = vmatpush.bf16.msra.mxu3 %v4821_v46  ;;  %v2398_v58 = vpop.f32.mrf.mxu3  ;;  %v4838_v46 = vld [vmem:[#allocation8 + $0x128] sm:$0xf0] }
 0x23c   : > { %2629 = vmatmul.bf16.vlgmr.msrb.gmra.mxu2 %v6035_v60  ;;  %v2385_v60 = vpop.f32.mrf.mxu1 }
 0x23d   : > { %3186 = vmatpush.bf16.msra.mxu2 %v4749_v37  ;;  %v5413_v37 = vld [vmem:[#allocation8 + $0x1b4] sm:$0xf0]  ;;  %v4873_v60 = vor.u32 %v5402_v10, %v4870_v3 }
 0x23e   : > { %v4909_v39 = vor.u32 %v5413_v37, %v4908_v35  ;;  %v4846_v35 = vld [vmem:[#allocation8 + $0x138] sm:$0xf0]  ;;  %v5429_v37 = vld [vmem:[#allocation8 + $0x234] sm:$0xf0] }
 0x23f   : > { %v2214_v7 = vpop.f32.mrf.mxu2  ;;  %v5425_v10 = vld [vmem:[#allocation8 + $0x214] sm:$0xf0] }
 0x240   : > { %v2228_v18 = vadd.f32 %v6048_v34, %v2214_v7  ;;  %v4700_v34 = vld [vmem:[#allocation8 + $0x10] sm:$0xf]  ;;  %3229 = vmatpush.bf16.msrb.mxu0 %v4909_v39  ;;  %v4865_v7 = vor.u32 %v5400_v41, %v4862_v6  ;;  %v5390_v6 = vld [vmem:[#allocation8 + $0x104] sm:$0xf] }
 0x241   : > { %3187 = vmatpush.bf16.msra.mxu2 %v4741_v32  ;;  %v4701_v31 = vor.u32 %v5361_v12, %v4700_v34  ;;  %v5409_v32 = vld [vmem:[#allocation8 + $0x194] sm:$0xf0]  ;;  %v4981_v34 = vor.u32 %v5431_v26, %v4980_v25  ;;  %v4804_v12 = vld [vmem:[#allocation8 + $0xe0] sm:$0xf]  ;;  %v4942_v25 = vld [vmem:[#allocation8 + $0x1f8] sm:$0xf0] }
 0x242   : > { %v2241_v27 = vadd.f32 %v6055_v61, %v2228_v18  ;;  %v5359_v61 = vld [vmem:[#allocation8 + $0x4] sm:$0xf0]  ;;  %v4893_v50 = vor.u32 %v5409_v32, %v4892_v48  ;;  %v5389_v18 = vld [vmem:[#allocation8 + $0xf4] sm:$0xf0]  ;;  %v4805_v33 = vor.u32 %v5387_v29, %v4804_v12  ;;  %v5418_v29 = vld [vmem:[#allocation8 + $0x1e4] sm:$0xf] }
 0x243   : > { %v4813_v20 = vor.u32 %v5389_v18, %v4812_v17  ;;  %v5427_v48 = vld [vmem:[#allocation8 + $0x224] sm:$0xf0]  ;;  %v4948_v17 = vld [vmem:[#allocation8 + $0x200] sm:$0xf] }
 0x244   : > { %v6076_v15 = vadd.f32 %v6053_v55, %v2241_v27  ;;  %v4693_v55 = vor.u32 %v5359_v61, %v4692_v38  ;;  %3230 = vmatpush.bf16.msrb.mxu0 %v4901_v47  ;;  %v2677_v27 = vperm.slane %v6087_v11, 2  ;;  %v4973_v38 = vor.u32 %v5429_v37, %v4972_v36  ;;  %v4796_v61 = vld [vmem:[#allocation8 + $0xd0] sm:$0xf]  ;;  %v4964_v47 = vld [vmem:[#allocation8 + $0x220] sm:$0xf] }
 0x245   : > { %3188 = vmatpush.bf16.msra.mxu2 %v4733_v54  ;;  %v5404_v54 = vld [vmem:[#allocation8 + $0x174] sm:$0xf]  ;;  %3199 = vmatpush.bf16.msra.mxu1 %v4813_v20  ;;  %v4797_v44 = vor.u32 %v5385_v40, %v4796_v61  ;;  %v5423_v18 = vld [vmem:[#allocation8 + $0x204] sm:$0xf0]  ;;  %v4764_v36 = vld [vmem:[#allocation8 + $0x90] sm:$0xf] }
 0x246   : > { %v5377_v37 = vld [vmem:[#allocation8 + $0x94] sm:$0xf0]  ;;  %v5388_v61 = vld [vmem:[#allocation8 + $0xf4] sm:$0xf]  ;;  %v4814_v40 = vld [vmem:[#allocation8 + $0xf8] sm:$0xf0] }
 0x247   : > { %v2216_v28 = vpop.f32.mrf.mxu2 }
 0x248   : > { %3231 = vmatpush.bf16.msrb.mxu0 %v4893_v50 }
 0x249   : > { %3189 = vmatpush.bf16.msra.mxu2 %v4725_v62  ;;  %v4881_v62 = vor.u32 %v5404_v54, %v4878_v56  ;;  %3200 = vmatpush.bf16.msra.mxu1 %v4805_v33 }
 0x24c   : > { %3232 = vmatpush.bf16.msrb.mxu0 %v4885_v57  ;;  %v4965_v57 = vor.u32 %v5427_v48, %v4964_v47  ;;  %v4756_v48 = vld [vmem:[#allocation8 + $0x80] sm:$0xf] }
 0x24d   : > { %3190 = vmatpush.bf16.msra.mxu2 %v4717_v30  ;;  %v4996_v30 = vld [vmem:[#allocation8 + $0x260] sm:$0xf]  ;;  %3201 = vmatpush.bf16.msra.mxu1 %v4797_v44  ;;  %v5416_v44 = vld [vmem:[#allocation8 + $0x1d4] sm:$0xf] }
 0x24e   : > { %v4997_v21 = vor.u32 %v5435_v4, %v4996_v30  ;;  %v5381_v30 = vld [vmem:[#allocation8 + $0xb4] sm:$0xf0] }
 0x250   : > { %3277 = vmatpush.bf16.msra.mxu0 %v4881_v62  ;;  %v5392_v62 = vld [vmem:[#allocation8 + $0x114] sm:$0xf] }
 0x251   : > { %3191 = vmatpush.bf16.msra.mxu2 %v4709_v19  ;;  %v5398_v19 = vld [vmem:[#allocation8 + $0x144] sm:$0xf]  ;;  %v4833_v4 = vor.u32 %v5392_v62, %v4830_v63  ;;  %3202 = vmatpush.bf16.msra.mxu1 %v4789_v1  ;;  %v4918_v62 = vld [vmem:[#allocation8 + $0x1c8] sm:$0xf0] }
 0x252   : > { %v4857_v23 = vor.u32 %v5398_v19, %v4854_v22  ;;  %v4949_v22 = vor.u32 %v5423_v18, %v4948_v17  ;;  %v5370_v63 = vld [vmem:[#allocation8 + $0x64] sm:$0xf]  ;;  %v4734_v17 = vld [vmem:[#allocation8 + $0x58] sm:$0xf0] }
 0x253   : > { %v5382_v18 = vld [vmem:[#allocation8 + $0xc4] sm:$0xf] }
 0x254   : > { %3278 = vmatpush.bf16.msra.mxu0 %v4873_v60  ;;  %v4780_v60 = vld [vmem:[#allocation8 + $0xb0] sm:$0xf] }
 0x255   : > { %3192 = vmatpush.bf16.msra.mxu2 %v4701_v31  ;;  %v5396_v31 = vld [vmem:[#allocation8 + $0x134] sm:$0xf] }
 0x256   : > { %v4849_v39 = vor.u32 %v5396_v31, %v4846_v35  ;;  %v4934_v31 = vld [vmem:[#allocation8 + $0x1e8] sm:$0xf0] }
 0x257   : > { %v4937_v35 = vor.u32 %v5418_v29, %v4934_v31  ;;  %v5408_v31 = vld [vmem:[#allocation8 + $0x194] sm:$0xf] }
 0x258   : > { %3279 = vmatpush.bf16.msra.mxu0 %v4865_v7  ;;  %v4822_v7 = vld [vmem:[#allocation8 + $0x108] sm:$0xf0] }
 0x259   : > { %3193 = vmatpush.bf16.msra.mxu2 %v4693_v55  ;;  %v5394_v55 = vld [vmem:[#allocation8 + $0x124] sm:$0xf]  ;;  %v4825_v20 = vor.u32 %v5390_v6, %v4822_v7  ;;  %v5412_v6 = vld [vmem:[#allocation8 + $0x1b4] sm:$0xf]  ;;  %v4910_v7 = vld [vmem:[#allocation8 + $0x1b8] sm:$0xf0] }
 0x25a   : > { %v4841_v56 = vor.u32 %v5394_v55, %v4838_v46  ;;  %v4926_v46 = vld [vmem:[#allocation8 + $0x1d8] sm:$0xf0] }
 0x25b   : > { %v4929_v47 = vor.u32 %v5416_v44, %v4926_v46  ;;  %v5362_v46 = vld [vmem:[#allocation8 + $0x24] sm:$0xf] }
 0x25c   : > { %3280 = vmatpush.bf16.msra.mxu0 %v4857_v23  ;;  %v5420_v23 = vld [vmem:[#allocation8 + $0x1f4] sm:$0xf] }
 0x25d   : > { %3238 = vmatpush.bf16.msrb.mxu2 %v5005_v2  ;;  %v4956_v2 = vld [vmem:[#allocation8 + $0x210] sm:$0xf]  ;;  %v4945_v26 = vor.u32 %v5420_v23, %v4942_v25  ;;  %v4902_v23 = vld [vmem:[#allocation8 + $0x1a8] sm:$0xf0] }
 0x25e   : > { %v4957_v41 = vor.u32 %v5425_v10, %v4956_v2  ;;  %v4742_v10 = vld [vmem:[#allocation8 + $0x68] sm:$0xf0] }
 0x25f   : > { %v2266_v5 = vpop.f32.mrf.mxu2  ;;  %v2617_v43 = vpop.f32.mrf.mxu0 }
 0x260   : > { %v2267_v42 = vadd.f32 %v2266_v5, %v6076_v15  ;;  %v2618_v32 = vadd.f32 %v2617_v43, %v6050_v14  ;;  %v2643_v50 = vpop.f32.mrf.mxu1  ;;  %3281 = vmatpush.bf16.msra.mxu0 %v4849_v39  ;;  %v4817_v43 = vor.u32 %v5388_v61, %v4814_v40 }
 0x261   : > { %3239 = vmatpush.bf16.msrb.mxu2 %v4997_v21 }
 0x262   : > { %v2644_v54 = vadd.f32 %v2643_v50, %v2267_v42  ;;  %v2685_v58 = vadd.f32 %v2675_v49, %v2618_v32  ;;  %v4772_v49 = vld [vmem:[#allocation8 + $0xa0] sm:$0xf]  ;;  %v2678_v42 = vperm.slane %v6087_v11, 3  ;;  %v5375_v32 = vld [vmem:[#allocation8 + $0x84] sm:$0xf0]  ;;  %3264 = vmatpush.bf16.msrb.mxu3 %v4817_v43 }
 0x263   : > { %v5372_v50 = vld [vmem:[#allocation8 + $0x74] sm:$0xf]  ;;  %v4757_v52 = vor.u32 %v5375_v32, %v4756_v48 }
 0x264   : > { %v2687_v15 = vadd.f32 %v2677_v27, %v2644_v54  ;;  %v2690_v3 = vmax.f32 %v2685_v58, 0.0  ;;  %3282 = vmatpush.bf16.msra.mxu0 %v4841_v56  ;;  %v5379_v27 = vld [vmem:[#allocation8 + $0xa4] sm:$0xf0]  ;;  %v5386_v54 = vld [vmem:[#allocation8 + $0xe4] sm:$0xf] }
 0x265   : > { %3240 = vmatpush.bf16.msrb.mxu2 %v4989_v13  ;;  %v4781_v13 = vor.u32 %v5381_v30, %v4780_v60  ;;  %v4806_v56 = vld [vmem:[#allocation8 + $0xe8] sm:$0xf0]  ;;  %v4745_v60 = vor.u32 %v5370_v63, %v4742_v10  ;;  %v5376_v32 = vld [vmem:[#allocation8 + $0x94] sm:$0xf]  ;;  %v2679_v10 = vperm.slane %v6087_v11, 4 }
 0x266   : > { %v2692_v14 = vmax.f32 %v2687_v15, 0.0  ;;  %v6093_v5 = vpack.c.bf16 %v2690_v3, %v2690_v3  ;;  %v2656_v21 = vpop.f32.mrf.mxu3  ;;  %v4809_v58 = vor.u32 %v5386_v54, %v4806_v56  ;;  %v4702_v54 = vld [vmem:[#allocation8 + $0x18] sm:$0xf0] }
 0x267   : > { %v2268_v28 = vpop.f32.mrf.mxu2  ;;  %v2619_v9 = vpop.f32.mrf.mxu0  ;;  %3203 = vmatpush.bf16.msra.mxu1 %v4781_v13  ;;  %v5368_v13 = vld [vmem:[#allocation8 + $0x54] sm:$0xf] }
 0x268   : > { %v6095_v8 = vpack.c.bf16 %v2692_v14, %v2692_v14  ;;  %3194 = vmatmul.bf16.vlgmr.msra.gmra.mxu2 %v6093_v5  ;;  %v2645_v19 = vpop.f32.mrf.mxu1  ;;  %3283 = vmatpush.bf16.msra.mxu0 %v4833_v4  ;;  %v4773_v28 = vor.u32 %v5379_v27, %v4772_v49  ;;  %v5384_v14 = vld [vmem:[#allocation8 + $0xd4] sm:$0xf]  ;;  %v4798_v4 = vld [vmem:[#allocation8 + $0xd8] sm:$0xf0]  ;;  %v4913_v9 = vor.u32 %v5412_v6, %v4910_v7  ;;  %v4726_v49 = vld [vmem:[#allocation8 + $0x48] sm:$0xf0] }
 0x269   : > { %3241 = vmatpush.bf16.msrb.mxu2 %v4981_v34  ;;  %3265 = vmatpush.bf16.msrb.mxu3 %v4809_v58  ;;  %v4737_v19 = vor.u32 %v5368_v13, %v4734_v17  ;;  %v5380_v27 = vld [vmem:[#allocation8 + $0xb4] sm:$0xf]  ;;  %v5374_v58 = vld [vmem:[#allocation8 + $0x84] sm:$0xf]  ;;  %v5006_v7 = vld [vmem:[#allocation8 + $0x278] sm:$0xf0] }
 0x26a   : > { %3220 = vmatmul.bf16.vlgmr.msra.gmra.mxu3 %v6095_v8 }
 0x26b   : > { %3204 = vmatpush.bf16.msra.mxu1 %v4773_v28 }
 0x26c   : > { %3284 = vmatpush.bf16.msra.mxu0 %v4825_v20  ;;  %v4790_v20 = vld [vmem:[#allocation8 + $0xc8] sm:$0xf0] }
 0x26d   : > { %3242 = vmatpush.bf16.msrb.mxu2 %v4973_v38  ;;  %v4765_v38 = vor.u32 %v5377_v37, %v4764_v36  ;;  %v4793_v25 = vor.u32 %v5382_v18, %v4790_v20  ;;  %v5364_v36 = vld [vmem:[#allocation8 + $0x34] sm:$0xf]  ;;  %v4718_v37 = vld [vmem:[#allocation8 + $0x38] sm:$0xf0]  ;;  %v4998_v18 = vld [vmem:[#allocation8 + $0x268] sm:$0xf0] }
 0x26e   : > { %v2658_v34 = vpop.f32.mrf.mxu3  ;;  %v4721_v40 = vor.u32 %v5364_v36, %v4718_v37  ;;  %v5422_v36 = vld [vmem:[#allocation8 + $0x204] sm:$0xf]  ;;  %v4950_v37 = vld [vmem:[#allocation8 + $0x208] sm:$0xf0] }
 0x26f   : > { %v6099_v12 = vpop.f32.mrf.mxu0  ;;  %3205 = vmatpush.bf16.msra.mxu1 %v4765_v38  ;;  %v4782_v34 = vld [vmem:[#allocation8 + $0xb8] sm:$0xf0]  ;;  %v4774_v38 = vld [vmem:[#allocation8 + $0xa8] sm:$0xf0] }
 0x271   : > { %3243 = vmatpush.bf16.msrb.mxu2 %v4965_v57 }
 0x273   : > { %3206 = vmatpush.bf16.msra.mxu1 %v4757_v52 }
 0x275   : > { %3244 = vmatpush.bf16.msrb.mxu2 %v4957_v41  ;;  %v4801_v41 = vor.u32 %v5384_v14, %v4798_v4  ;;  %v2676_v4 = vperm.slane %v6087_v11, 1  ;;  %v4990_v11 = vld [vmem:[#allocation8 + $0x258] sm:$0xf0] }
 0x277   : > { %v2671_v1 = vpop.f32.mrf.mxu0  ;;  %3266 = vmatpush.bf16.msrb.mxu3 %v4801_v41 }
 0x278   : > { %v4694_v1 = vld [vmem:[#allocation8 + $0x8] sm:$0xf0] }
 0x279   : > { %3245 = vmatpush.bf16.msrb.mxu2 %v4949_v22  ;;  %v5410_v22 = vld [vmem:[#allocation8 + $0x1a4] sm:$0xf] }
 0x27a   : > { %v4905_v28 = vor.u32 %v5410_v22, %v4902_v23  ;;  %v5432_v22 = vld [vmem:[#allocation8 + $0x254] sm:$0xf] }
 0x27b   : > { %3267 = vmatpush.bf16.msrb.mxu3 %v4793_v25  ;;  %v4993_v23 = vor.u32 %v5432_v22, %v4990_v11  ;;  %v4982_v25 = vld [vmem:[#allocation8 + $0x248] sm:$0xf0] }
 0x27d   : > { %3290 = vmatpush.bf16.msra.mxu2 %v4945_v26  ;;  %v5366_v26 = vld [vmem:[#allocation8 + $0x44] sm:$0xf] }
 0x27e   : > { %v4729_v29 = vor.u32 %v5366_v26, %v4726_v49  ;;  %v5428_v26 = vld [vmem:[#allocation8 + $0x234] sm:$0xf]  ;;  %v4974_v49 = vld [vmem:[#allocation8 + $0x238] sm:$0xf0] }
 0x27f   : > { %v2318_v33 = vpop.f32.mrf.mxu2 }
 0x280   : > { %v2319_v39 = vadd.f32 %v2318_v33, %v6082_v53  ;;  %v4750_v53 = vld [vmem:[#allocation8 + $0x78] sm:$0xf0] }
 0x281   : > { %3291 = vmatpush.bf16.msra.mxu2 %v4937_v35  ;;  %v4753_v57 = vor.u32 %v5372_v50, %v4750_v53  ;;  %v4894_v33 = vld [vmem:[#allocation8 + $0x198] sm:$0xf0]  ;;  %v4785_v35 = vor.u32 %v5380_v27, %v4782_v34  ;;  %v5360_v53 = vld [vmem:[#allocation8 + $0x14] sm:$0xf]  ;;  %v4977_v27 = vor.u32 %v5428_v26, %v4974_v49  ;;  %v4966_v34 = vld [vmem:[#allocation8 + $0x228] sm:$0xf0] }
 0x282   : > { %v2332_v55 = vadd.f32 %v6061_v24, %v2319_v39  ;;  %v5414_v24 = vld [vmem:[#allocation8 + $0x1c4] sm:$0xf]  ;;  %v4897_v61 = vor.u32 %v5408_v31, %v4894_v33  ;;  %v4766_v50 = vld [vmem:[#allocation8 + $0x98] sm:$0xf0]  ;;  %v5424_v31 = vld [vmem:[#allocation8 + $0x214] sm:$0xf] }
 0x283   : > { %v4921_v2 = vor.u32 %v5414_v24, %v4918_v62  ;;  %3251 = vmatpush.bf16.msrb.mxu1 %v4753_v57  ;;  %v5378_v39 = vld [vmem:[#allocation8 + $0xa4] sm:$0xf]  ;;  %3268 = vmatpush.bf16.msrb.mxu3 %v4785_v35  ;;  %v4705_v57 = vor.u32 %v5360_v53, %v4702_v54  ;;  %v4758_v24 = vld [vmem:[#allocation8 + $0x88] sm:$0xf0]  ;;  %v4958_v33 = vld [vmem:[#allocation8 + $0x218] sm:$0xf0] }
 0x284   : > { %v2657_v51 = vadd.f32 %v2656_v21, %v2332_v55  ;;  %v5406_v55 = vld [vmem:[#allocation8 + $0x184] sm:$0xf]  ;;  %v4777_v43 = vor.u32 %v5378_v39, %v4774_v38  ;;  %v4761_v62 = vor.u32 %v5374_v58, %v4758_v24  ;;  %v4961_v35 = vor.u32 %v5424_v31, %v4958_v33  ;;  %v5453_v53 = vld [vmem:[#allocation10 + $0x78] sm:$0xff]  ;;  %v5451_v58 = vld [vmem:[#allocation10 + $0x68] sm:$0xff] }
 0x285   : > { %3292 = vmatpush.bf16.msra.mxu2 %v4929_v47  ;;  %v4710_v47 = vld [vmem:[#allocation8 + $0x28] sm:$0xf0]  ;;  %v4953_v39 = vor.u32 %v5422_v36, %v4950_v37  ;;  %v5438_v54 = vld [vmem:[#allocation10] sm:$0xff] }
 0x286   : > { %v2688_v15 = vadd.f32 %v2678_v42, %v2657_v51  ;;  %v4886_v42 = vld [vmem:[#allocation8 + $0x188] sm:$0xf0]  ;;  %v4713_v48 = vor.u32 %v5362_v46, %v4710_v47  ;;  %v4769_v51 = vor.u32 %v5376_v32, %v4766_v50  ;;  %v5442_v47 = vld [vmem:[#allocation10 + $0x20] sm:$0xff]  ;;  %v5440_v50 = vld [vmem:[#allocation10 + $0x10] sm:$0xff] }
 0x287   : > { %v2320_v3 = vpop.f32.mrf.mxu2  ;;  %3252 = vmatpush.bf16.msrb.mxu1 %v4745_v60  ;;  %v4889_v44 = vor.u32 %v5406_v55, %v4886_v42  ;;  %3269 = vmatpush.bf16.msrb.mxu3 %v4777_v43  ;;  %v5450_v24 = vld [vmem:[#allocation10 + $0x60] sm:$0xff]  ;;  %v5456_v31 = vld [vmem:[%s6176_s12 + $0x10] sm:$0xff] }
 0x288   : > { %v2693_v30 = vmax.f32 %v2688_v15, 0.0  ;;  %v5358_v15 = vld [vmem:[#allocation8 + $0x4] sm:$0xf] }
 0x289   : > { %3293 = vmatpush.bf16.msra.mxu2 %v4921_v2  ;;  %v5455_v33 = vld [vmem:[%s6176_s12 + $0x8] sm:$0xff] }
 0x28a   : > { %v6104_v21 = vpack.c.bf16 %v2693_v30, %v2693_v30 }
 0x28b   : > { %3253 = vmatpush.bf16.msrb.mxu1 %v4737_v19  ;;  %3270 = vmatpush.bf16.msrb.mxu3 %v4769_v51 }
 0x28c   : > { %3233 = vmatmul.bf16.vlgmr.msrb.gmra.mxu0 %v6104_v21 }
 0x28d   : > { %3294 = vmatpush.bf16.msra.mxu2 %v4913_v9  ;;  %3462 = vmatpush.bf16.msrb.mxu0 %v5453_v53 }
 0x28f   : > { %3254 = vmatpush.bf16.msrb.mxu1 %v4729_v29  ;;  %3271 = vmatpush.bf16.msrb.mxu3 %v4761_v62 }
 0x291   : > { %3295 = vmatpush.bf16.msra.mxu2 %v4905_v28  ;;  %v5426_v28 = vld [vmem:[#allocation8 + $0x224] sm:$0xf] }
 0x292   : > { %v4969_v29 = vor.u32 %v5426_v28, %v4966_v34  ;;  %v5459_v28 = vld [vmem:[%s6176_s12 + $0x28] sm:$0xff]  ;;  %v5458_v34 = vld [vmem:[%s6176_s12 + $0x20] sm:$0xff] }
 0x293   : > { %3255 = vmatpush.bf16.msrb.mxu1 %v4721_v40  ;;  %v5445_v40 = vld [vmem:[#allocation10 + $0x38] sm:$0xff] }
 0x294   : > { %3449 = vmatpush.bf16.msra.mxu3 %v5445_v40 }
 0x295   : > { %3296 = vmatpush.bf16.msra.mxu2 %v4897_v61 }
 0x297   : > { %3256 = vmatpush.bf16.msrb.mxu1 %v4713_v48  ;;  %v5441_v48 = vld [vmem:[#allocation10 + $0x18] sm:$0xff] }
 0x299   : > { %3297 = vmatpush.bf16.msra.mxu2 %v4889_v44  ;;  %v5443_v44 = vld [vmem:[#allocation10 + $0x28] sm:$0xff] }
 0x29b   : > { %3257 = vmatpush.bf16.msrb.mxu1 %v4705_v57 }
 0x29c   : > { %3285 = vmatmul.bf16.vlgmr.msra.gmra.mxu0 %v6095_v8  ;;  %v4697_v8 = vor.u32 %v5358_v15, %v4694_v1  ;;  %v2780_v15 = vld [vmem:[%s6173_s9] sm:$0x3]  ;;  %v5448_v1 = vld [vmem:[#allocation10 + $0x50] sm:$0xff] }
 0x29f   : > { %v2370_v52 = vpop.f32.mrf.mxu2  ;;  %3258 = vmatpush.bf16.msrb.mxu1 %v4697_v8 }
 0x2a0   : > { %v2371_v56 = vadd.f32 %v2370_v52, %v6071_v0  ;;  %v5439_v52 = vld [vmem:[#allocation10 + $0x8] sm:$0xff] }
 0x2a2   : > { %v2384_v63 = vadd.f32 %v6069_v59, %v2371_v56  ;;  %v5452_v56 = vld [vmem:[#allocation10 + $0x70] sm:$0xff] }
 0x2a3   : > { %3463 = vmatpush.bf16.msrb.mxu0 %v5452_v56 }
 0x2a4   : > { %v2397_v2 = vadd.f32 %v6078_v45, %v2384_v63  ;;  %v5436_v45 = vld [vmem:[#allocation8 + $0x274] sm:$0xf]  ;;  %v5449_v63 = vld [vmem:[#allocation10 + $0x58] sm:$0xff] }
 0x2a5   : > { %v5009_v13 = vor.u32 %v5436_v45, %v5006_v7  ;;  %v5461_v7 = vld [vmem:[%s6176_s12 + $0x38] sm:$0xff] }
 0x2a6   : > { %v2670_v3 = vadd.f32 %v6099_v12, %v2397_v2  ;;  %v5434_v12 = vld [vmem:[#allocation8 + $0x264] sm:$0xf]  ;;  %v3182_v2 = vperm.slane %v2780_v15, 0 }
 0x2a7   : > { %v2372_v60 = vpop.f32.mrf.mxu2  ;;  %v5001_v20 = vor.u32 %v5434_v12, %v4998_v18  ;;  %3464 = vmatpush.bf16.msrb.mxu0 %v5451_v58  ;;  %v3183_v12 = vperm.slane %v2780_v15, 1 }
 0x2a8   : > { %v2689_v0 = vadd.f32 %v2679_v10, %v2670_v3  ;;  %v5447_v3 = vld [vmem:[#allocation10 + $0x48] sm:$0xff] }
 0x2aa   : > { %v2694_v30 = vmax.f32 %v2689_v0, 0.0 }
 0x2ab   : > { %3465 = vmatpush.bf16.msrb.mxu0 %v5450_v24 }
 0x2ac   : > { %v2699_v14 = vpack.c.bf16 %v2694_v30, %v2694_v30 }
 0x2ae   : > { %3246 = vmatmul.bf16.vlgmr.msrb.gmra.mxu2 %v2699_v14 }
 0x2af   : > { %3466 = vmatpush.bf16.msrb.mxu0 %v5449_v63  ;;  %3542 = vmatpush.bf16.msrb.mxu2 %v5461_v7 }
 0x2b3   : > { %3467 = vmatpush.bf16.msrb.mxu0 %v5448_v1 }
 0x2b7   : > { %3468 = vmatpush.bf16.msrb.mxu0 %v5447_v3 }
 0x2be   : > { %3298 = vmatmul.bf16.vlgmr.msra.gmra.mxu2 %v6104_v21 }
 0x2bf   : > { %v2630_v59 = vpop.f32.mrf.mxu2 }
 0x2c0   : > { %v2631_v41 = vadd.f32 %v2630_v59, %v6064_v16  ;;  %v5430_v16 = vld [vmem:[#allocation8 + $0x244] sm:$0xf] }
 0x2c1   : > { %v4985_v21 = vor.u32 %v5430_v16, %v4982_v25 }
 0x2c2   : > { %v2686_v6 = vadd.f32 %v2676_v4, %v2631_v41 }
 0x2c4   : > { %v2691_v9 = vmax.f32 %v2686_v6, 0.0 }
 0x2c6   : > { %v2696_v17 = vpack.c.bf16 %v2691_v9, %v2691_v9 }
 0x2c7   : > { %v2632_v19 = vpop.f32.mrf.mxu2 }
 0x2c8   : > { %3207 = vmatmul.bf16.vlgmr.msra.gmra.mxu1 %v2696_v17  ;;  %3272 = vmatmul.bf16.vlgmr.msrb.gmra.mxu3 %v2696_v17 }
 0x2c9   : > { %3303 = vmatpush.bf16.msra.mxu1 %v5009_v13 }
 0x2cd   : > { %3304 = vmatpush.bf16.msra.mxu1 %v5001_v20 }
 0x2d1   : > { %3305 = vmatpush.bf16.msra.mxu1 %v4993_v23 }
 0x2d5   : > { %3306 = vmatpush.bf16.msra.mxu1 %v4985_v21 }
 0x2d8   : > { %3259 = vmatmul.bf16.vlgmr.msrb.gmra.mxu1 %v6093_v5  ;;  %v5444_v5 = vld [vmem:[#allocation10 + $0x30] sm:$0xff] }
 0x2d9   : > { %3307 = vmatpush.bf16.msra.mxu1 %v4977_v27  ;;  %3450 = vmatpush.bf16.msra.mxu3 %v5444_v5  ;;  %v5460_v27 = vld [vmem:[%s6176_s12 + $0x30] sm:$0xff]  ;;  %v3493_v5 = vld [vmem:[#allocation2] sm:$0x1] }
 0x2da   : > { %3543 = vmatpush.bf16.msrb.mxu2 %v5460_v27 }
 0x2dd   : > { %3308 = vmatpush.bf16.msra.mxu1 %v4969_v29  ;;  %3451 = vmatpush.bf16.msra.mxu3 %v5443_v44  ;;  %v5457_v29 = vld [vmem:[%s6176_s12 + $0x18] sm:$0xff] }
 0x2de   : > { %3544 = vmatpush.bf16.msrb.mxu2 %v5459_v28 }
 0x2e1   : > { %3309 = vmatpush.bf16.msra.mxu1 %v4961_v35  ;;  %3452 = vmatpush.bf16.msra.mxu3 %v5442_v47  ;;  %v5454_v35 = vld [vmem:[%s6176_s12] sm:$0xff] }
 0x2e2   : > { %3545 = vmatpush.bf16.msrb.mxu2 %v5458_v34 }
 0x2e5   : > { %3310 = vmatpush.bf16.msra.mxu1 %v4953_v39  ;;  %3453 = vmatpush.bf16.msra.mxu3 %v5441_v48  ;;  %v3352_v39 = vld [vmem:[%s6193_s5] sm:$0x1] }
 0x2e6   : > { %3546 = vmatpush.bf16.msrb.mxu2 %v5457_v29 }
 0x2e8   : > { %3311 = vmatmul.bf16.vlgmr.msra.gmra.mxu1 %v2699_v14  ;;  %v5446_v14 = vld [vmem:[#allocation10 + $0x40] sm:$0xff] }
 0x2e9   : > { %3454 = vmatpush.bf16.msra.mxu3 %v5440_v50  ;;  %3469 = vmatpush.bf16.msrb.mxu0 %v5446_v14 }
 0x2ea   : > { %3547 = vmatpush.bf16.msrb.mxu2 %v5456_v31 }
 0x2eb   : > { %v3195_v38 = vpop.f32.mrf.mxu2 }
 0x2ec   : > { %v3196_v10 = vadd.f32 %v3195_v38, %v3182_v2 }
 0x2ed   : > { %v3221_v61 = vpop.f32.mrf.mxu3  ;;  %3455 = vmatpush.bf16.msra.mxu3 %v5439_v52 }
 0x2ee   : > { %3548 = vmatpush.bf16.msrb.mxu2 %v5455_v33 }
 0x2f1   : > { %3456 = vmatpush.bf16.msra.mxu3 %v5438_v54 }
 0x2f2   : > { %3549 = vmatpush.bf16.msrb.mxu2 %v5454_v35 }
 0x2f3   : > { %v3197_v55 = vpop.f32.mrf.mxu2 }
 0x2f5   : > { %v3223_v42 = vpop.f32.mrf.mxu3 }
 0x309   : > { %v3234_v43 = vpop.f32.mrf.mxu0 }
 0x311   : > { %v3236_v46 = vpop.f32.mrf.mxu0 }
 0x319   : > { %v3286_v32 = vpop.f32.mrf.mxu0 }
 0x321   : > { %v3288_v51 = vpop.f32.mrf.mxu0 }
 0x331   : > { %v3247_v57 = vpop.f32.mrf.mxu2 }
 0x339   : > { %v3249_v62 = vpop.f32.mrf.mxu2 }
 0x341   : > { %v3299_v8 = vpop.f32.mrf.mxu2 }
 0x345   : > { %v3208_v60 = vpop.f32.mrf.mxu1 }
 0x346   : > { %v3209_v0 = vadd.f32 %v3208_v60, %v3196_v10 }
 0x348   : > { %v3222_v30 = vadd.f32 %v3221_v61, %v3209_v0 }
 0x349   : > { %v3301_v6 = vpop.f32.mrf.mxu2 }
 0x34a   : > { %v3235_v4 = vadd.f32 %v3234_v43, %v3222_v30 }
 0x34b   : > { %v3273_v59 = vpop.f32.mrf.mxu3 }
 0x34c   : > { %v3248_v41 = vadd.f32 %v3247_v57, %v3235_v4 }
 0x34d   : > { %v3210_v45 = vpop.f32.mrf.mxu1 }
 0x34e   : > { %v3316_v9 = vmax.f32 %v3248_v41, 0.0 }
 0x350   : > { %v3318_v13 = vpack.c.bf16 %v3316_v9, %v3316_v9 }
 0x352   : > { %3457 = vmatmul.bf16.vlgmr.msra.gmra.mxu3 %v3318_v13 }
 0x353   : > { %v3275_v17 = vpop.f32.mrf.mxu3 }
 0x355   : > { %v3260_v18 = vpop.f32.mrf.mxu1 }
 0x356   : > { %v3261_v19 = vadd.f32 %v3260_v18, %v3183_v12 }
 0x358   : > { %v3274_v20 = vadd.f32 %v3273_v59, %v3261_v19 }
 0x35a   : > { %v3287_v11 = vadd.f32 %v3286_v32, %v3274_v20 }
 0x35c   : > { %v3300_v23 = vadd.f32 %v3299_v8, %v3287_v11 }
 0x35d   : > { %v3262_v22 = vpop.f32.mrf.mxu1 }
 0x365   : > { %v3312_v16 = vpop.f32.mrf.mxu1 }
 0x366   : > { %v3313_v25 = vadd.f32 %v3312_v16, %v3300_v23 }
 0x368   : > { %v3317_v21 = vmax.f32 %v3313_v25, 0.0 }
 0x36a   : > { %v3319_v26 = vpack.c.bf16 %v3317_v21, %v3317_v21 }
 0x36c   : > { %3470 = vmatmul.bf16.vlgmr.msrb.gmra.mxu0 %v3319_v26 }
 0x36d   : > { %v3314_v49 = vpop.f32.mrf.mxu1 }
 0x3d5   : > { %v3458_v36 = vpop.f32.mrf.mxu3 }
 0x3d6   : > { %v3459_v38 = vadd.f32 %v3458_v36, %v3352_v39 }
 0x3dd   : > { %v3460_v37 = vpop.f32.mrf.mxu3 }
 0x3e9   : > { %v3471_v61 = vpop.f32.mrf.mxu0 }
 0x3ea   : > { %v3472_v40 = vadd.f32 %v3471_v61, %v3459_v38 }
 0x3ec   : > { %v3475_v55 = vmax.f32 %v3472_v40, 0.0 }
 0x3ee   : > { %v3476_v42 = vpack.c.bf16 %v3475_v55, %v3475_v55 }
 0x3f0   : > { %3550 = vmatmul.bf16.vlgmr.msrb.gmra.mxu2 %v3476_v42 }
 0x3f1   : > { %v3473_v43 = vpop.f32.mrf.mxu0 }
 0x473   : > { %v3551_v44 = vpop.f32.mrf.mxu2 }
 0x474   : > { %v3552_v46 = vadd.f32 %v3551_v44, %v3493_v5 }
 0x476   : > { %3556 = vst.msk [vmem:[%s590_s27] sm:$0x1] %vm3555_vm1, %v3552_v46 }
 0x47b   : > { %v3553_v47 = vpop.f32.mrf.mxu2 }
 0x47c PF: > { %p28_p1 = scmp.ge.s32.totalorder %s5899_s22, 4   ;;  %s6195_s15 = smov %s5734_s16 }
 0x47d   : > { %s6196_s16 = smov %s5738_s17  ;;  %s6197_s17 = smov %s5908_s8 }
 0x47e   : > { %s6198_s18 = smov %s5899_s22  ;;  %30 = sbr.rel (!%p28_p1) target bundleno = 10 (0xa), region = 138 }
 0x483   :  { %3574 = vsyncpa [#allocation4], 1 }
 0x484   :  { %3576 = vsyncpa [#allocation4 + $0x1], 1 }
 0x485   :  { %3577 = vsyncpa [#allocation6], 1 }
 0x486   :  { %3578 = vsyncpa [#allocation9], 1 }

</bundles_post_ra>
